<compile_context>
chip_gen: v7x
topology: tpu7x:2x2x1
jax: 0.10.0
libtpu: 0.0.40
codegen_flags: <defaults>
</compile_context>

<pallas_src>
import functools

import jax
import jax.numpy as jnp
from jax.experimental import pallas as pl
from jax.experimental.pallas import tpu as pltpu


def _volume_render_kernel(maxdisp, width, v_ref, c1_ref, c2_ref, d1_ref, d2_ref):
    D = maxdisp
    W = width
    f32 = jnp.float32
    Cc = c1_ref.shape[0]

    # Ref-window loads (static starts under the unroll -> offset loads, no
    # lane-select chains), cast to f32 *after* the slice.
    def win1(ch, d):
        # view-1 window: columns [0, W)
        return v_ref[ch, d, :, pl.ds(0, W)].astype(f32)

    def win2(ch, d):
        # view-2 window at disparity index d: columns [D-1-d, D-1-d+W)
        return v_ref[ch, d, :, pl.ds(D - 1 - d, W)].astype(f32)

    # ---- Pass 1: per-pixel, per-view running max over disparity.
    # Pure VPU accumulation across the D slices; zero XLU work.  Because the
    # max is per-pixel (like the reference softmax), exp args below are <= 0
    # and den >= 1 -> no underflow / NaN risk, no epsilon guard needed.
    m1 = win1(0, 0)
    m2 = win2(0, 0)
    for d in range(1, D):
        m1 = jnp.maximum(m1, win1(0, d))
        m2 = jnp.maximum(m2, win2(0, d))

    # ---- Pass 2: fused exp + accumulation (no shifted stacks, no (D,.,.)
    # temporaries ever materialized).
    zero = jnp.zeros_like(m1)                     # (tH, W) f32
    den1 = zero
    den2 = zero
    dnum1 = zero
    dnum2 = zero
    cnum1 = [zero] * Cc
    cnum2 = [zero] * Cc

    # TODO(synk): at deployment D (=192) switch this static unroll to a
    # lax.fori_loop over d with unroll=4..8 if compile time or vreg spills
    # become an issue; at the small/test D the unrolled body stays tiny.
    for d in range(D):
        e1 = jnp.exp(win1(0, d) - m1)
        e2 = jnp.exp(win2(0, d) - m2)
        # Prefix-sum disparity numerator: adding the running den *before*
        # this iteration's e contributes exactly (D-1-d) copies of e_d in
        # total, i.e. e_d * disp_filter[d].  Removes the per-d multiply.
        if d:
            dnum1 = dnum1 + den1
            dnum2 = dnum2 + den2
        den1 = den1 + e1
        den2 = den2 + e2
        for c in range(Cc):
            cnum1[c] = cnum1[c] + e1 * win1(1 + c, d)
            cnum2[c] = cnum2[c] + e2 * win2(1 + c, d)

    # Deferred softmax normalization: one approx EUP reciprocal + one
    # Newton-Raphson step per view (~f32 accuracy) instead of D divides/pixel.
    inv1 = pl.reciprocal(den1, approx=True)
    inv1 = inv1 * (2.0 - den1 * inv1)
    inv2 = pl.reciprocal(den2, approx=True)
    inv2 = inv2 * (2.0 - den2 * inv2)

    d1_ref[...] = (dnum1 * inv1).astype(d1_ref.dtype)
    d2_ref[...] = (dnum2 * inv2).astype(d2_ref.dtype)
    for c in range(Cc):
        c1_ref[c] = (cnum1[c] * inv1).astype(c1_ref.dtype)
        c2_ref[c] = (cnum2[c] * inv2).astype(c2_ref.dtype)


def _vmem_capacity_bytes():
    """Physical VMEM of the local TPU generation, or None if unknown."""
    try:
        return int(pltpu.get_tpu_info().vmem_capacity_bytes)
    except Exception:
        return None


def _pick_tile_h(H, C, Cc, D, W, Wv, itemsize, budget_bytes):
    """Largest H-tile that divides H, satisfies the (8, 128) sublane rule and
    whose full per-step footprint fits the VMEM budget (double-buffered input
    block + double-buffered output blocks + in-kernel f32 working set)."""

    def footprint(th):
        in_bytes = 2 * C * D * th * Wv * itemsize            # double-buffered input
        out_bytes = 2 * (2 * Cc + 2) * th * W * itemsize     # double-buffered outputs
        work_bytes = (10 + 2 * Cc) * th * W * 4              # m1/m2, e1/e2, accumulators
        return int(1.15 * (in_bytes + out_bytes + work_bytes))  # +15% compiler-temp slack

    if H % 8 != 0:
        return H                                             # block dim must equal full extent
    candidates = [th for th in range(8, H + 1, 8) if H % th == 0]
    fitting = [th for th in candidates if footprint(th) <= budget_bytes]
    if fitting:
        return max(fitting)
    # TODO(synk): no H-tile fits VMEM at this shape (large D*Wv, mainly v7x's
    # 64 MiB): add a W-tiled grid axis with a (maxdisp - 1)-column halo
    # (element-indexed BlockSpec or manual DMA from a pl.ANY input).
    return min(candidates)


def volume_render(v, x, y, maxdisp, *, tile_h=None):
    """Pallas implementation of VolumeRender.forward(v, x, y)."""
    del y  # unused by the reference forward
    B, C, D, H, Wv = v.shape
    _, _, Hx, W = x.shape
    assert D == maxdisp
    assert Hx == H
    assert Wv >= W + maxdisp - 1
    Cc = C - 1

    # VMEM budget / scoped limit derived from the actual generation's capacity
    # (v5e/v6e: 128 MiB -> 96 MiB scoped; v7x: 64 MiB -> ~54 MiB scoped);
    # falls back to the conservative 32 MiB default if the query fails.
    cap = _vmem_capacity_bytes()
    vmem_limit = 32 * 1024 * 1024
    if cap is not None and cap > 64 * 1024 * 1024:
        vmem_limit = 96 * 1024 * 1024
    elif cap is not None and cap > 32 * 1024 * 1024:
        vmem_limit = int(0.85 * cap)
    tile_budget = int(0.85 * vmem_limit)

    tH = tile_h if tile_h is not None else _pick_tile_h(
        H, C, Cc, D, W, Wv, v.dtype.itemsize, tile_budget)
    assert tH == H or (H % tH == 0 and tH % 8 == 0), (H, tH)

    kernel = functools.partial(_volume_render_kernel, maxdisp, W)

    out_shape = (
        jax.ShapeDtypeStruct((B, Cc, H, W), v.dtype),   # color_1
        jax.ShapeDtypeStruct((B, Cc, H, W), v.dtype),   # color_2
        jax.ShapeDtypeStruct((B, H, W), v.dtype),       # disp_1
        jax.ShapeDtypeStruct((B, H, W), v.dtype),       # disp_2
    )

    return pl.pallas_call(
        kernel,
        out_shape=out_shape,
        grid=(B, H // tH),
        in_specs=[
            pl.BlockSpec((None, C, D, tH, Wv), lambda b, h: (b, 0, 0, h, 0)),
        ],
        out_specs=(
            pl.BlockSpec((None, Cc, tH, W), lambda b, h: (b, 0, h, 0)),
            pl.BlockSpec((None, Cc, tH, W), lambda b, h: (b, 0, h, 0)),
            pl.BlockSpec((None, tH, W), lambda b, h: (b, h, 0)),
            pl.BlockSpec((None, tH, W), lambda b, h: (b, h, 0)),
        ),
        compiler_params=pltpu.CompilerParams(
            # Both grid axes are independent (softmax is over D only), so both
            # can be sharded across TensorCores (helps v7x when B is small).
            dimension_semantics=("parallel", "parallel"),
            vmem_limit_bytes=vmem_limit,
        ),
    )(v)


def volume_render_reference(v, x, maxdisp):
    """Pure-JAX reference mirroring the PyTorch forward, for validation."""
    B, C, D, H, Wv = v.shape
    W = x.shape[3]
    block = v[:, 0]                     # (B, D, H, Wv)
    color = v[:, 1:]                    # (B, Cc, D, H, Wv)
    block_1 = block[:, :, :, :W]
    color_1s = color[:, :, :, :, :W]
    block_2 = jnp.stack(
        [block[:, d, :, (D - 1 - d):(D - 1 - d) + W] for d in range(D)], axis=1)
    color_2s = jnp.stack(
        [color[:, :, d, :, (D - 1 - d):(D - 1 - d) + W] for d in range(D)], axis=2)
    w1 = jax.nn.softmax(block_1, axis=1)
    w2 = jax.nn.softmax(block_2, axis=1)
    dvals = jnp.arange(D - 1, -1, -1, dtype=v.dtype).reshape(1, D, 1, 1)
    disp_1 = jnp.sum(w1 * dvals, axis=1)
    disp_2 = jnp.sum(w2 * dvals, axis=1)
    color_1 = jnp.sum(w1[:, None] * color_1s, axis=2)
    color_2 = jnp.sum(w2[:, None] * color_2s, axis=2)
    return color_1, color_2, disp_1, disp_2


if __name__ == "__main__":
    # Small shapes consistent with the module's forward.
    B = 2          # batch
    Cc = 3         # color channels -> v has 1 + 3 = 4 channels
    MAXDISP = 8    # disparity bins (maxdisp)
    H = 16         # height
    W = 16         # width
    Wv = W + MAXDISP - 1   # extended width so shifted windows are valid

    key = jax.random.PRNGKey(0)
    kv, kx, ky = jax.random.split(key, 3)
    v = jax.random.normal(kv, (B, 1 + Cc, MAXDISP, H, Wv), dtype=jnp.float32)
    x = jax.random.normal(kx, (B, 4, H, W), dtype=jnp.float32)   # NCHW, shape-only
    y = jax.random.normal(ky, (B, 4, H, W), dtype=jnp.float32)   # unused

    refs = volume_render_reference(v, x, MAXDISP)
    names = ("color_1", "color_2", "disp_1", "disp_2")

    # Run 1: explicit tile_h=8 -> grid (B, 2): exercises the H-tiled pipeline.
    # Run 2: auto tile picker (full-H tile at this toy shape).
    for kwargs in ({"tile_h": 8}, {}):
        outs = volume_render(v, x, y, MAXDISP, **kwargs)
        outs = jax.block_until_ready(outs)
        for name, o, r in zip(names, outs, refs):
            assert o.shape == r.shape, (name, o.shape, r.shape)
            # Tolerance sized for the EUP approx-reciprocal (+ one Newton step)
            # normalization; everything else is f32-exact vs. the reference.
            assert jnp.allclose(o, r, atol=1e-4, rtol=1e-4), name

    print("KERNEL_OK")
</pallas_src>

<mosaic_0001>
module attributes {stable_mosaic.version = 11 : i64} {
  func.func @_volume_render_kernel(%arg0: i32, %arg1: i32, %arg2: memref<1x4x8x8x23xf32, #tpu.memory_space<vmem>>, %arg3: memref<1x3x8x16xf32, #tpu.memory_space<vmem>>, %arg4: memref<1x3x8x16xf32, #tpu.memory_space<vmem>>, %arg5: memref<1x8x16xf32, #tpu.memory_space<vmem>>, %arg6: memref<1x8x16xf32, #tpu.memory_space<vmem>>) attributes {dimension_semantics = [#tpu.dimension_semantics<parallel>, #tpu.dimension_semantics<parallel>], iteration_bounds = array<i64: 2, 2>, scalar_prefetch = 0 : i64, scratch_operands = 0 : i64, tpu.core_type = #tpu.core_type<tc>, window_params = [{transform_indices = @transform_0, window_bounds = array<i64: 1, 4, 8, 8, 23>}, {transform_indices = @transform_1, window_bounds = array<i64: 1, 3, 8, 16>}, {transform_indices = @transform_2, window_bounds = array<i64: 1, 3, 8, 16>}, {transform_indices = @transform_3, window_bounds = array<i64: 1, 8, 16>}, {transform_indices = @transform_4, window_bounds = array<i64: 1, 8, 16>}]} {
    %c0 = arith.constant 0 : index
    %c0_0 = arith.constant 0 : index
    %c0_1 = arith.constant 0 : index
    %c0_2 = arith.constant 0 : index
    %c0_3 = arith.constant 0 : index
    %0 = vector.load %arg2[%c0, %c0_0, %c0_1, %c0_2, %c0_3] : memref<1x4x8x8x23xf32, #tpu.memory_space<vmem>>, vector<1x1x1x8x16xf32>
    %1 = vector.shape_cast %0 : vector<1x1x1x8x16xf32> to vector<8x16xf32>
    %c0_4 = arith.constant 0 : index
    %c0_5 = arith.constant 0 : index
    %c0_6 = arith.constant 0 : index
    %c0_7 = arith.constant 0 : index
    %c7 = arith.constant 7 : index
    %2 = vector.load %arg2[%c0_4, %c0_5, %c0_6, %c0_7, %c7] : memref<1x4x8x8x23xf32, #tpu.memory_space<vmem>>, vector<1x1x1x8x16xf32>
    %3 = vector.shape_cast %2 : vector<1x1x1x8x16xf32> to vector<8x16xf32>
    %c0_8 = arith.constant 0 : index
    %c0_9 = arith.constant 0 : index
    %c1 = arith.constant 1 : index
    %c0_10 = arith.constant 0 : index
    %c0_11 = arith.constant 0 : index
    %4 = vector.load %arg2[%c0_8, %c0_9, %c1, %c0_10, %c0_11] : memref<1x4x8x8x23xf32, #tpu.memory_space<vmem>>, vector<1x1x1x8x16xf32>
    %5 = vector.shape_cast %4 : vector<1x1x1x8x16xf32> to vector<8x16xf32>
    %6 = arith.maximumf %1, %5 : vector<8x16xf32>
    %c0_12 = arith.constant 0 : index
    %c0_13 = arith.constant 0 : index
    %c1_14 = arith.constant 1 : index
    %c0_15 = arith.constant 0 : index
    %c6 = arith.constant 6 : index
    %7 = vector.load %arg2[%c0_12, %c0_13, %c1_14, %c0_15, %c6] : memref<1x4x8x8x23xf32, #tpu.memory_space<vmem>>, vector<1x1x1x8x16xf32>
    %8 = vector.shape_cast %7 : vector<1x1x1x8x16xf32> to vector<8x16xf32>
    %9 = arith.maximumf %3, %8 : vector<8x16xf32>
    %c0_16 = arith.constant 0 : index
    %c0_17 = arith.constant 0 : index
    %c2 = arith.constant 2 : index
    %c0_18 = arith.constant 0 : index
    %c0_19 = arith.constant 0 : index
    %10 = vector.load %arg2[%c0_16, %c0_17, %c2, %c0_18, %c0_19] : memref<1x4x8x8x23xf32, #tpu.memory_space<vmem>>, vector<1x1x1x8x16xf32>
    %11 = vector.shape_cast %10 : vector<1x1x1x8x16xf32> to vector<8x16xf32>
    %12 = arith.maximumf %6, %11 : vector<8x16xf32>
    %c0_20 = arith.constant 0 : index
    %c0_21 = arith.constant 0 : index
    %c2_22 = arith.constant 2 : index
    %c0_23 = arith.constant 0 : index
    %c5 = arith.constant 5 : index
    %13 = vector.load %arg2[%c0_20, %c0_21, %c2_22, %c0_23, %c5] : memref<1x4x8x8x23xf32, #tpu.memory_space<vmem>>, vector<1x1x1x8x16xf32>
    %14 = vector.shape_cast %13 : vector<1x1x1x8x16xf32> to vector<8x16xf32>
    %15 = arith.maximumf %9, %14 : vector<8x16xf32>
    %c0_24 = arith.constant 0 : index
    %c0_25 = arith.constant 0 : index
    %c3 = arith.constant 3 : index
    %c0_26 = arith.constant 0 : index
    %c0_27 = arith.constant 0 : index
    %16 = vector.load %arg2[%c0_24, %c0_25, %c3, %c0_26, %c0_27] : memref<1x4x8x8x23xf32, #tpu.memory_space<vmem>>, vector<1x1x1x8x16xf32>
    %17 = vector.shape_cast %16 : vector<1x1x1x8x16xf32> to vector<8x16xf32>
    %18 = arith.maximumf %12, %17 : vector<8x16xf32>
    %c0_28 = arith.constant 0 : index
    %c0_29 = arith.constant 0 : index
    %c3_30 = arith.constant 3 : index
    %c0_31 = arith.constant 0 : index
    %c4 = arith.constant 4 : index
    %19 = vector.load %arg2[%c0_28, %c0_29, %c3_30, %c0_31, %c4] : memref<1x4x8x8x23xf32, #tpu.memory_space<vmem>>, vector<1x1x1x8x16xf32>
    %20 = vector.shape_cast %19 : vector<1x1x1x8x16xf32> to vector<8x16xf32>
    %21 = arith.maximumf %15, %20 : vector<8x16xf32>
    %c0_32 = arith.constant 0 : index
    %c0_33 = arith.constant 0 : index
    %c4_34 = arith.constant 4 : index
    %c0_35 = arith.constant 0 : index
    %c0_36 = arith.constant 0 : index
    %22 = vector.load %arg2[%c0_32, %c0_33, %c4_34, %c0_35, %c0_36] : memref<1x4x8x8x23xf32, #tpu.memory_space<vmem>>, vector<1x1x1x8x16xf32>
    %23 = vector.shape_cast %22 : vector<1x1x1x8x16xf32> to vector<8x16xf32>
    %24 = arith.maximumf %18, %23 : vector<8x16xf32>
    %c0_37 = arith.constant 0 : index
    %c0_38 = arith.constant 0 : index
    %c4_39 = arith.constant 4 : index
    %c0_40 = arith.constant 0 : index
    %c3_41 = arith.constant 3 : index
    %25 = vector.load %arg2[%c0_37, %c0_38, %c4_39, %c0_40, %c3_41] : memref<1x4x8x8x23xf32, #tpu.memory_space<vmem>>, vector<1x1x1x8x16xf32>
    %26 = vector.shape_cast %25 : vector<1x1x1x8x16xf32> to vector<8x16xf32>
    %27 = arith.maximumf %21, %26 : vector<8x16xf32>
    %c0_42 = arith.constant 0 : index
    %c0_43 = arith.constant 0 : index
    %c5_44 = arith.constant 5 : index
    %c0_45 = arith.constant 0 : index
    %c0_46 = arith.constant 0 : index
    %28 = vector.load %arg2[%c0_42, %c0_43, %c5_44, %c0_45, %c0_46] : memref<1x4x8x8x23xf32, #tpu.memory_space<vmem>>, vector<1x1x1x8x16xf32>
    %29 = vector.shape_cast %28 : vector<1x1x1x8x16xf32> to vector<8x16xf32>
    %30 = arith.maximumf %24, %29 : vector<8x16xf32>
    %c0_47 = arith.constant 0 : index
    %c0_48 = arith.constant 0 : index
    %c5_49 = arith.constant 5 : index
    %c0_50 = arith.constant 0 : index
    %c2_51 = arith.constant 2 : index
    %31 = vector.load %arg2[%c0_47, %c0_48, %c5_49, %c0_50, %c2_51] : memref<1x4x8x8x23xf32, #tpu.memory_space<vmem>>, vector<1x1x1x8x16xf32>
    %32 = vector.shape_cast %31 : vector<1x1x1x8x16xf32> to vector<8x16xf32>
    %33 = arith.maximumf %27, %32 : vector<8x16xf32>
    %c0_52 = arith.constant 0 : index
    %c0_53 = arith.constant 0 : index
    %c6_54 = arith.constant 6 : index
    %c0_55 = arith.constant 0 : index
    %c0_56 = arith.constant 0 : index
    %34 = vector.load %arg2[%c0_52, %c0_53, %c6_54, %c0_55, %c0_56] : memref<1x4x8x8x23xf32, #tpu.memory_space<vmem>>, vector<1x1x1x8x16xf32>
    %35 = vector.shape_cast %34 : vector<1x1x1x8x16xf32> to vector<8x16xf32>
    %36 = arith.maximumf %30, %35 : vector<8x16xf32>
    %c0_57 = arith.constant 0 : index
    %c0_58 = arith.constant 0 : index
    %c6_59 = arith.constant 6 : index
    %c0_60 = arith.constant 0 : index
    %c1_61 = arith.constant 1 : index
    %37 = vector.load %arg2[%c0_57, %c0_58, %c6_59, %c0_60, %c1_61] : memref<1x4x8x8x23xf32, #tpu.memory_space<vmem>>, vector<1x1x1x8x16xf32>
    %38 = vector.shape_cast %37 : vector<1x1x1x8x16xf32> to vector<8x16xf32>
    %39 = arith.maximumf %33, %38 : vector<8x16xf32>
    %c0_62 = arith.constant 0 : index
    %c0_63 = arith.constant 0 : index
    %c7_64 = arith.constant 7 : index
    %c0_65 = arith.constant 0 : index
    %c0_66 = arith.constant 0 : index
    %40 = vector.load %arg2[%c0_62, %c0_63, %c7_64, %c0_65, %c0_66] : memref<1x4x8x8x23xf32, #tpu.memory_space<vmem>>, vector<1x1x1x8x16xf32>
    %41 = vector.shape_cast %40 : vector<1x1x1x8x16xf32> to vector<8x16xf32>
    %42 = arith.maximumf %36, %41 : vector<8x16xf32>
    %c0_67 = arith.constant 0 : index
    %c0_68 = arith.constant 0 : index
    %c7_69 = arith.constant 7 : index
    %c0_70 = arith.constant 0 : index
    %c0_71 = arith.constant 0 : index
    %43 = vector.load %arg2[%c0_67, %c0_68, %c7_69, %c0_70, %c0_71] : memref<1x4x8x8x23xf32, #tpu.memory_space<vmem>>, vector<1x1x1x8x16xf32>
    %44 = vector.shape_cast %43 : vector<1x1x1x8x16xf32> to vector<8x16xf32>
    %45 = arith.maximumf %39, %44 : vector<8x16xf32>
    %cst = arith.constant 0.000000e+00 : f32
    %46 = vector.broadcast %cst : f32 to vector<8x16xf32>
    %c0_72 = arith.constant 0 : index
    %c0_73 = arith.constant 0 : index
    %c0_74 = arith.constant 0 : index
    %c0_75 = arith.constant 0 : index
    %c0_76 = arith.constant 0 : index
    %47 = vector.load %arg2[%c0_72, %c0_73, %c0_74, %c0_75, %c0_76] : memref<1x4x8x8x23xf32, #tpu.memory_space<vmem>>, vector<1x1x1x8x16xf32>
    %48 = vector.shape_cast %47 : vector<1x1x1x8x16xf32> to vector<8x16xf32>
    %49 = arith.subf %48, %42 : vector<8x16xf32>
    %50 = math.exp %49 : vector<8x16xf32>
    %c0_77 = arith.constant 0 : index
    %c0_78 = arith.constant 0 : index
    %c0_79 = arith.constant 0 : index
    %c0_80 = arith.constant 0 : index
    %c7_81 = arith.constant 7 : index
    %51 = vector.load %arg2[%c0_77, %c0_78, %c0_79, %c0_80, %c7_81] : memref<1x4x8x8x23xf32, #tpu.memory_space<vmem>>, vector<1x1x1x8x16xf32>
    %52 = vector.shape_cast %51 : vector<1x1x1x8x16xf32> to vector<8x16xf32>
    %53 = arith.subf %52, %45 : vector<8x16xf32>
    %54 = math.exp %53 : vector<8x16xf32>
    %55 = arith.addf %46, %50 : vector<8x16xf32>
    %56 = arith.addf %46, %54 : vector<8x16xf32>
    %c0_82 = arith.constant 0 : index
    %c1_83 = arith.constant 1 : index
    %c0_84 = arith.constant 0 : index
    %c0_85 = arith.constant 0 : index
    %c0_86 = arith.constant 0 : index
    %57 = vector.load %arg2[%c0_82, %c1_83, %c0_84, %c0_85, %c0_86] : memref<1x4x8x8x23xf32, #tpu.memory_space<vmem>>, vector<1x1x1x8x16xf32>
    %58 = vector.shape_cast %57 : vector<1x1x1x8x16xf32> to vector<8x16xf32>
    %59 = arith.mulf %50, %58 : vector<8x16xf32>
    %60 = arith.addf %46, %59 : vector<8x16xf32>
    %c0_87 = arith.constant 0 : index
    %c1_88 = arith.constant 1 : index
    %c0_89 = arith.constant 0 : index
    %c0_90 = arith.constant 0 : index
    %c7_91 = arith.constant 7 : index
    %61 = vector.load %arg2[%c0_87, %c1_88, %c0_89, %c0_90, %c7_91] : memref<1x4x8x8x23xf32, #tpu.memory_space<vmem>>, vector<1x1x1x8x16xf32>
    %62 = vector.shape_cast %61 : vector<1x1x1x8x16xf32> to vector<8x16xf32>
    %63 = arith.mulf %54, %62 : vector<8x16xf32>
    %64 = arith.addf %46, %63 : vector<8x16xf32>
    %c0_92 = arith.constant 0 : index
    %c2_93 = arith.constant 2 : index
    %c0_94 = arith.constant 0 : index
    %c0_95 = arith.constant 0 : index
    %c0_96 = arith.constant 0 : index
    %65 = vector.load %arg2[%c0_92, %c2_93, %c0_94, %c0_95, %c0_96] : memref<1x4x8x8x23xf32, #tpu.memory_space<vmem>>, vector<1x1x1x8x16xf32>
    %66 = vector.shape_cast %65 : vector<1x1x1x8x16xf32> to vector<8x16xf32>
    %67 = arith.mulf %50, %66 : vector<8x16xf32>
    %68 = arith.addf %46, %67 : vector<8x16xf32>
    %c0_97 = arith.constant 0 : index
    %c2_98 = arith.constant 2 : index
    %c0_99 = arith.constant 0 : index
    %c0_100 = arith.constant 0 : index
    %c7_101 = arith.constant 7 : index
    %69 = vector.load %arg2[%c0_97, %c2_98, %c0_99, %c0_100, %c7_101] : memref<1x4x8x8x23xf32, #tpu.memory_space<vmem>>, vector<1x1x1x8x16xf32>
    %70 = vector.shape_cast %69 : vector<1x1x1x8x16xf32> to vector<8x16xf32>
    %71 = arith.mulf %54, %70 : vector<8x16xf32>
    %72 = arith.addf %46, %71 : vector<8x16xf32>
    %c0_102 = arith.constant 0 : index
    %c3_103 = arith.constant 3 : index
    %c0_104 = arith.constant 0 : index
    %c0_105 = arith.constant 0 : index
    %c0_106 = arith.constant 0 : index
    %73 = vector.load %arg2[%c0_102, %c3_103, %c0_104, %c0_105, %c0_106] : memref<1x4x8x8x23xf32, #tpu.memory_space<vmem>>, vector<1x1x1x8x16xf32>
    %74 = vector.shape_cast %73 : vector<1x1x1x8x16xf32> to vector<8x16xf32>
    %75 = arith.mulf %50, %74 : vector<8x16xf32>
    %76 = arith.addf %46, %75 : vector<8x16xf32>
    %c0_107 = arith.constant 0 : index
    %c3_108 = arith.constant 3 : index
    %c0_109 = arith.constant 0 : index
    %c0_110 = arith.constant 0 : index
    %c7_111 = arith.constant 7 : index
    %77 = vector.load %arg2[%c0_107, %c3_108, %c0_109, %c0_110, %c7_111] : memref<1x4x8x8x23xf32, #tpu.memory_space<vmem>>, vector<1x1x1x8x16xf32>
    %78 = vector.shape_cast %77 : vector<1x1x1x8x16xf32> to vector<8x16xf32>
    %79 = arith.mulf %54, %78 : vector<8x16xf32>
    %80 = arith.addf %46, %79 : vector<8x16xf32>
    %c0_112 = arith.constant 0 : index
    %c0_113 = arith.constant 0 : index
    %c1_114 = arith.constant 1 : index
    %c0_115 = arith.constant 0 : index
    %c0_116 = arith.constant 0 : index
    %81 = vector.load %arg2[%c0_112, %c0_113, %c1_114, %c0_115, %c0_116] : memref<1x4x8x8x23xf32, #tpu.memory_space<vmem>>, vector<1x1x1x8x16xf32>
    %82 = vector.shape_cast %81 : vector<1x1x1x8x16xf32> to vector<8x16xf32>
    %83 = arith.subf %82, %42 : vector<8x16xf32>
    %84 = math.exp %83 : vector<8x16xf32>
    %c0_117 = arith.constant 0 : index
    %c0_118 = arith.constant 0 : index
    %c1_119 = arith.constant 1 : index
    %c0_120 = arith.constant 0 : index
    %c6_121 = arith.constant 6 : index
    %85 = vector.load %arg2[%c0_117, %c0_118, %c1_119, %c0_120, %c6_121] : memref<1x4x8x8x23xf32, #tpu.memory_space<vmem>>, vector<1x1x1x8x16xf32>
    %86 = vector.shape_cast %85 : vector<1x1x1x8x16xf32> to vector<8x16xf32>
    %87 = arith.subf %86, %45 : vector<8x16xf32>
    %88 = math.exp %87 : vector<8x16xf32>
    %89 = arith.addf %46, %55 : vector<8x16xf32>
    %90 = arith.addf %46, %56 : vector<8x16xf32>
    %91 = arith.addf %55, %84 : vector<8x16xf32>
    %92 = arith.addf %56, %88 : vector<8x16xf32>
    %c0_122 = arith.constant 0 : index
    %c1_123 = arith.constant 1 : index
    %c1_124 = arith.constant 1 : index
    %c0_125 = arith.constant 0 : index
    %c0_126 = arith.constant 0 : index
    %93 = vector.load %arg2[%c0_122, %c1_123, %c1_124, %c0_125, %c0_126] : memref<1x4x8x8x23xf32, #tpu.memory_space<vmem>>, vector<1x1x1x8x16xf32>
    %94 = vector.shape_cast %93 : vector<1x1x1x8x16xf32> to vector<8x16xf32>
    %95 = arith.mulf %84, %94 : vector<8x16xf32>
    %96 = arith.addf %60, %95 : vector<8x16xf32>
    %c0_127 = arith.constant 0 : index
    %c1_128 = arith.constant 1 : index
    %c1_129 = arith.constant 1 : index
    %c0_130 = arith.constant 0 : index
    %c6_131 = arith.constant 6 : index
    %97 = vector.load %arg2[%c0_127, %c1_128, %c1_129, %c0_130, %c6_131] : memref<1x4x8x8x23xf32, #tpu.memory_space<vmem>>, vector<1x1x1x8x16xf32>
    %98 = vector.shape_cast %97 : vector<1x1x1x8x16xf32> to vector<8x16xf32>
    %99 = arith.mulf %88, %98 : vector<8x16xf32>
    %100 = arith.addf %64, %99 : vector<8x16xf32>
    %c0_132 = arith.constant 0 : index
    %c2_133 = arith.constant 2 : index
    %c1_134 = arith.constant 1 : index
    %c0_135 = arith.constant 0 : index
    %c0_136 = arith.constant 0 : index
    %101 = vector.load %arg2[%c0_132, %c2_133, %c1_134, %c0_135, %c0_136] : memref<1x4x8x8x23xf32, #tpu.memory_space<vmem>>, vector<1x1x1x8x16xf32>
    %102 = vector.shape_cast %101 : vector<1x1x1x8x16xf32> to vector<8x16xf32>
    %103 = arith.mulf %84, %102 : vector<8x16xf32>
    %104 = arith.addf %68, %103 : vector<8x16xf32>
    %c0_137 = arith.constant 0 : index
    %c2_138 = arith.constant 2 : index
    %c1_139 = arith.constant 1 : index
    %c0_140 = arith.constant 0 : index
    %c6_141 = arith.constant 6 : index
    %105 = vector.load %arg2[%c0_137, %c2_138, %c1_139, %c0_140, %c6_141] : memref<1x4x8x8x23xf32, #tpu.memory_space<vmem>>, vector<1x1x1x8x16xf32>
    %106 = vector.shape_cast %105 : vector<1x1x1x8x16xf32> to vector<8x16xf32>
    %107 = arith.mulf %88, %106 : vector<8x16xf32>
    %108 = arith.addf %72, %107 : vector<8x16xf32>
    %c0_142 = arith.constant 0 : index
    %c3_143 = arith.constant 3 : index
    %c1_144 = arith.constant 1 : index
    %c0_145 = arith.constant 0 : index
    %c0_146 = arith.constant 0 : index
    %109 = vector.load %arg2[%c0_142, %c3_143, %c1_144, %c0_145, %c0_146] : memref<1x4x8x8x23xf32, #tpu.memory_space<vmem>>, vector<1x1x1x8x16xf32>
    %110 = vector.shape_cast %109 : vector<1x1x1x8x16xf32> to vector<8x16xf32>
    %111 = arith.mulf %84, %110 : vector<8x16xf32>
    %112 = arith.addf %76, %111 : vector<8x16xf32>
    %c0_147 = arith.constant 0 : index
    %c3_148 = arith.constant 3 : index
    %c1_149 = arith.constant 1 : index
    %c0_150 = arith.constant 0 : index
    %c6_151 = arith.constant 6 : index
    %113 = vector.load %arg2[%c0_147, %c3_148, %c1_149, %c0_150, %c6_151] : memref<1x4x8x8x23xf32, #tpu.memory_space<vmem>>, vector<1x1x1x8x16xf32>
    %114 = vector.shape_cast %113 : vector<1x1x1x8x16xf32> to vector<8x16xf32>
    %115 = arith.mulf %88, %114 : vector<8x16xf32>
    %116 = arith.addf %80, %115 : vector<8x16xf32>
    %c0_152 = arith.constant 0 : index
    %c0_153 = arith.constant 0 : index
    %c2_154 = arith.constant 2 : index
    %c0_155 = arith.constant 0 : index
    %c0_156 = arith.constant 0 : index
    %117 = vector.load %arg2[%c0_152, %c0_153, %c2_154, %c0_155, %c0_156] : memref<1x4x8x8x23xf32, #tpu.memory_space<vmem>>, vector<1x1x1x8x16xf32>
    %118 = vector.shape_cast %117 : vector<1x1x1x8x16xf32> to vector<8x16xf32>
    %119 = arith.subf %118, %42 : vector<8x16xf32>
    %120 = math.exp %119 : vector<8x16xf32>
    %c0_157 = arith.constant 0 : index
    %c0_158 = arith.constant 0 : index
    %c2_159 = arith.constant 2 : index
    %c0_160 = arith.constant 0 : index
    %c5_161 = arith.constant 5 : index
    %121 = vector.load %arg2[%c0_157, %c0_158, %c2_159, %c0_160, %c5_161] : memref<1x4x8x8x23xf32, #tpu.memory_space<vmem>>, vector<1x1x1x8x16xf32>
    %122 = vector.shape_cast %121 : vector<1x1x1x8x16xf32> to vector<8x16xf32>
    %123 = arith.subf %122, %45 : vector<8x16xf32>
    %124 = math.exp %123 : vector<8x16xf32>
    %125 = arith.addf %89, %91 : vector<8x16xf32>
    %126 = arith.addf %90, %92 : vector<8x16xf32>
    %127 = arith.addf %91, %120 : vector<8x16xf32>
    %128 = arith.addf %92, %124 : vector<8x16xf32>
    %c0_162 = arith.constant 0 : index
    %c1_163 = arith.constant 1 : index
    %c2_164 = arith.constant 2 : index
    %c0_165 = arith.constant 0 : index
    %c0_166 = arith.constant 0 : index
    %129 = vector.load %arg2[%c0_162, %c1_163, %c2_164, %c0_165, %c0_166] : memref<1x4x8x8x23xf32, #tpu.memory_space<vmem>>, vector<1x1x1x8x16xf32>
    %130 = vector.shape_cast %129 : vector<1x1x1x8x16xf32> to vector<8x16xf32>
    %131 = arith.mulf %120, %130 : vector<8x16xf32>
    %132 = arith.addf %96, %131 : vector<8x16xf32>
    %c0_167 = arith.constant 0 : index
    %c1_168 = arith.constant 1 : index
    %c2_169 = arith.constant 2 : index
    %c0_170 = arith.constant 0 : index
    %c5_171 = arith.constant 5 : index
    %133 = vector.load %arg2[%c0_167, %c1_168, %c2_169, %c0_170, %c5_171] : memref<1x4x8x8x23xf32, #tpu.memory_space<vmem>>, vector<1x1x1x8x16xf32>
    %134 = vector.shape_cast %133 : vector<1x1x1x8x16xf32> to vector<8x16xf32>
    %135 = arith.mulf %124, %134 : vector<8x16xf32>
    %136 = arith.addf %100, %135 : vector<8x16xf32>
    %c0_172 = arith.constant 0 : index
    %c2_173 = arith.constant 2 : index
    %c2_174 = arith.constant 2 : index
    %c0_175 = arith.constant 0 : index
    %c0_176 = arith.constant 0 : index
    %137 = vector.load %arg2[%c0_172, %c2_173, %c2_174, %c0_175, %c0_176] : memref<1x4x8x8x23xf32, #tpu.memory_space<vmem>>, vector<1x1x1x8x16xf32>
    %138 = vector.shape_cast %137 : vector<1x1x1x8x16xf32> to vector<8x16xf32>
    %139 = arith.mulf %120, %138 : vector<8x16xf32>
    %140 = arith.addf %104, %139 : vector<8x16xf32>
    %c0_177 = arith.constant 0 : index
    %c2_178 = arith.constant 2 : index
    %c2_179 = arith.constant 2 : index
    %c0_180 = arith.constant 0 : index
    %c5_181 = arith.constant 5 : index
    %141 = vector.load %arg2[%c0_177, %c2_178, %c2_179, %c0_180, %c5_181] : memref<1x4x8x8x23xf32, #tpu.memory_space<vmem>>, vector<1x1x1x8x16xf32>
    %142 = vector.shape_cast %141 : vector<1x1x1x8x16xf32> to vector<8x16xf32>
    %143 = arith.mulf %124, %142 : vector<8x16xf32>
    %144 = arith.addf %108, %143 : vector<8x16xf32>
    %c0_182 = arith.constant 0 : index
    %c3_183 = arith.constant 3 : index
    %c2_184 = arith.constant 2 : index
    %c0_185 = arith.constant 0 : index
    %c0_186 = arith.constant 0 : index
    %145 = vector.load %arg2[%c0_182, %c3_183, %c2_184, %c0_185, %c0_186] : memref<1x4x8x8x23xf32, #tpu.memory_space<vmem>>, vector<1x1x1x8x16xf32>
    %146 = vector.shape_cast %145 : vector<1x1x1x8x16xf32> to vector<8x16xf32>
    %147 = arith.mulf %120, %146 : vector<8x16xf32>
    %148 = arith.addf %112, %147 : vector<8x16xf32>
    %c0_187 = arith.constant 0 : index
    %c3_188 = arith.constant 3 : index
    %c2_189 = arith.constant 2 : index
    %c0_190 = arith.constant 0 : index
    %c5_191 = arith.constant 5 : index
    %149 = vector.load %arg2[%c0_187, %c3_188, %c2_189, %c0_190, %c5_191] : memref<1x4x8x8x23xf32, #tpu.memory_space<vmem>>, vector<1x1x1x8x16xf32>
    %150 = vector.shape_cast %149 : vector<1x1x1x8x16xf32> to vector<8x16xf32>
    %151 = arith.mulf %124, %150 : vector<8x16xf32>
    %152 = arith.addf %116, %151 : vector<8x16xf32>
    %c0_192 = arith.constant 0 : index
    %c0_193 = arith.constant 0 : index
    %c3_194 = arith.constant 3 : index
    %c0_195 = arith.constant 0 : index
    %c0_196 = arith.constant 0 : index
    %153 = vector.load %arg2[%c0_192, %c0_193, %c3_194, %c0_195, %c0_196] : memref<1x4x8x8x23xf32, #tpu.memory_space<vmem>>, vector<1x1x1x8x16xf32>
    %154 = vector.shape_cast %153 : vector<1x1x1x8x16xf32> to vector<8x16xf32>
    %155 = arith.subf %154, %42 : vector<8x16xf32>
    %156 = math.exp %155 : vector<8x16xf32>
    %c0_197 = arith.constant 0 : index
    %c0_198 = arith.constant 0 : index
    %c3_199 = arith.constant 3 : index
    %c0_200 = arith.constant 0 : index
    %c4_201 = arith.constant 4 : index
    %157 = vector.load %arg2[%c0_197, %c0_198, %c3_199, %c0_200, %c4_201] : memref<1x4x8x8x23xf32, #tpu.memory_space<vmem>>, vector<1x1x1x8x16xf32>
    %158 = vector.shape_cast %157 : vector<1x1x1x8x16xf32> to vector<8x16xf32>
    %159 = arith.subf %158, %45 : vector<8x16xf32>
    %160 = math.exp %159 : vector<8x16xf32>
    %161 = arith.addf %125, %127 : vector<8x16xf32>
    %162 = arith.addf %126, %128 : vector<8x16xf32>
    %163 = arith.addf %127, %156 : vector<8x16xf32>
    %164 = arith.addf %128, %160 : vector<8x16xf32>
    %c0_202 = arith.constant 0 : index
    %c1_203 = arith.constant 1 : index
    %c3_204 = arith.constant 3 : index
    %c0_205 = arith.constant 0 : index
    %c0_206 = arith.constant 0 : index
    %165 = vector.load %arg2[%c0_202, %c1_203, %c3_204, %c0_205, %c0_206] : memref<1x4x8x8x23xf32, #tpu.memory_space<vmem>>, vector<1x1x1x8x16xf32>
    %166 = vector.shape_cast %165 : vector<1x1x1x8x16xf32> to vector<8x16xf32>
    %167 = arith.mulf %156, %166 : vector<8x16xf32>
    %168 = arith.addf %132, %167 : vector<8x16xf32>
    %c0_207 = arith.constant 0 : index
    %c1_208 = arith.constant 1 : index
    %c3_209 = arith.constant 3 : index
    %c0_210 = arith.constant 0 : index
    %c4_211 = arith.constant 4 : index
    %169 = vector.load %arg2[%c0_207, %c1_208, %c3_209, %c0_210, %c4_211] : memref<1x4x8x8x23xf32, #tpu.memory_space<vmem>>, vector<1x1x1x8x16xf32>
    %170 = vector.shape_cast %169 : vector<1x1x1x8x16xf32> to vector<8x16xf32>
    %171 = arith.mulf %160, %170 : vector<8x16xf32>
    %172 = arith.addf %136, %171 : vector<8x16xf32>
    %c0_212 = arith.constant 0 : index
    %c2_213 = arith.constant 2 : index
    %c3_214 = arith.constant 3 : index
    %c0_215 = arith.constant 0 : index
    %c0_216 = arith.constant 0 : index
    %173 = vector.load %arg2[%c0_212, %c2_213, %c3_214, %c0_215, %c0_216] : memref<1x4x8x8x23xf32, #tpu.memory_space<vmem>>, vector<1x1x1x8x16xf32>
    %174 = vector.shape_cast %173 : vector<1x1x1x8x16xf32> to vector<8x16xf32>
    %175 = arith.mulf %156, %174 : vector<8x16xf32>
    %176 = arith.addf %140, %175 : vector<8x16xf32>
    %c0_217 = arith.constant 0 : index
    %c2_218 = arith.constant 2 : index
    %c3_219 = arith.constant 3 : index
    %c0_220 = arith.constant 0 : index
    %c4_221 = arith.constant 4 : index
    %177 = vector.load %arg2[%c0_217, %c2_218, %c3_219, %c0_220, %c4_221] : memref<1x4x8x8x23xf32, #tpu.memory_space<vmem>>, vector<1x1x1x8x16xf32>
    %178 = vector.shape_cast %177 : vector<1x1x1x8x16xf32> to vector<8x16xf32>
    %179 = arith.mulf %160, %178 : vector<8x16xf32>
    %180 = arith.addf %144, %179 : vector<8x16xf32>
    %c0_222 = arith.constant 0 : index
    %c3_223 = arith.constant 3 : index
    %c3_224 = arith.constant 3 : index
    %c0_225 = arith.constant 0 : index
    %c0_226 = arith.constant 0 : index
    %181 = vector.load %arg2[%c0_222, %c3_223, %c3_224, %c0_225, %c0_226] : memref<1x4x8x8x23xf32, #tpu.memory_space<vmem>>, vector<1x1x1x8x16xf32>
    %182 = vector.shape_cast %181 : vector<1x1x1x8x16xf32> to vector<8x16xf32>
    %183 = arith.mulf %156, %182 : vector<8x16xf32>
    %184 = arith.addf %148, %183 : vector<8x16xf32>
    %c0_227 = arith.constant 0 : index
    %c3_228 = arith.constant 3 : index
    %c3_229 = arith.constant 3 : index
    %c0_230 = arith.constant 0 : index
    %c4_231 = arith.constant 4 : index
    %185 = vector.load %arg2[%c0_227, %c3_228, %c3_229, %c0_230, %c4_231] : memref<1x4x8x8x23xf32, #tpu.memory_space<vmem>>, vector<1x1x1x8x16xf32>
    %186 = vector.shape_cast %185 : vector<1x1x1x8x16xf32> to vector<8x16xf32>
    %187 = arith.mulf %160, %186 : vector<8x16xf32>
    %188 = arith.addf %152, %187 : vector<8x16xf32>
    %c0_232 = arith.constant 0 : index
    %c0_233 = arith.constant 0 : index
    %c4_234 = arith.constant 4 : index
    %c0_235 = arith.constant 0 : index
    %c0_236 = arith.constant 0 : index
    %189 = vector.load %arg2[%c0_232, %c0_233, %c4_234, %c0_235, %c0_236] : memref<1x4x8x8x23xf32, #tpu.memory_space<vmem>>, vector<1x1x1x8x16xf32>
    %190 = vector.shape_cast %189 : vector<1x1x1x8x16xf32> to vector<8x16xf32>
    %191 = arith.subf %190, %42 : vector<8x16xf32>
    %192 = math.exp %191 : vector<8x16xf32>
    %c0_237 = arith.constant 0 : index
    %c0_238 = arith.constant 0 : index
    %c4_239 = arith.constant 4 : index
    %c0_240 = arith.constant 0 : index
    %c3_241 = arith.constant 3 : index
    %193 = vector.load %arg2[%c0_237, %c0_238, %c4_239, %c0_240, %c3_241] : memref<1x4x8x8x23xf32, #tpu.memory_space<vmem>>, vector<1x1x1x8x16xf32>
    %194 = vector.shape_cast %193 : vector<1x1x1x8x16xf32> to vector<8x16xf32>
    %195 = arith.subf %194, %45 : vector<8x16xf32>
    %196 = math.exp %195 : vector<8x16xf32>
    %197 = arith.addf %161, %163 : vector<8x16xf32>
    %198 = arith.addf %162, %164 : vector<8x16xf32>
    %199 = arith.addf %163, %192 : vector<8x16xf32>
    %200 = arith.addf %164, %196 : vector<8x16xf32>
    %c0_242 = arith.constant 0 : index
    %c1_243 = arith.constant 1 : index
    %c4_244 = arith.constant 4 : index
    %c0_245 = arith.constant 0 : index
    %c0_246 = arith.constant 0 : index
    %201 = vector.load %arg2[%c0_242, %c1_243, %c4_244, %c0_245, %c0_246] : memref<1x4x8x8x23xf32, #tpu.memory_space<vmem>>, vector<1x1x1x8x16xf32>
    %202 = vector.shape_cast %201 : vector<1x1x1x8x16xf32> to vector<8x16xf32>
    %203 = arith.mulf %192, %202 : vector<8x16xf32>
    %204 = arith.addf %168, %203 : vector<8x16xf32>
    %c0_247 = arith.constant 0 : index
    %c1_248 = arith.constant 1 : index
    %c4_249 = arith.constant 4 : index
    %c0_250 = arith.constant 0 : index
    %c3_251 = arith.constant 3 : index
    %205 = vector.load %arg2[%c0_247, %c1_248, %c4_249, %c0_250, %c3_251] : memref<1x4x8x8x23xf32, #tpu.memory_space<vmem>>, vector<1x1x1x8x16xf32>
    %206 = vector.shape_cast %205 : vector<1x1x1x8x16xf32> to vector<8x16xf32>
    %207 = arith.mulf %196, %206 : vector<8x16xf32>
    %208 = arith.addf %172, %207 : vector<8x16xf32>
    %c0_252 = arith.constant 0 : index
    %c2_253 = arith.constant 2 : index
    %c4_254 = arith.constant 4 : index
    %c0_255 = arith.constant 0 : index
    %c0_256 = arith.constant 0 : index
    %209 = vector.load %arg2[%c0_252, %c2_253, %c4_254, %c0_255, %c0_256] : memref<1x4x8x8x23xf32, #tpu.memory_space<vmem>>, vector<1x1x1x8x16xf32>
    %210 = vector.shape_cast %209 : vector<1x1x1x8x16xf32> to vector<8x16xf32>
    %211 = arith.mulf %192, %210 : vector<8x16xf32>
    %212 = arith.addf %176, %211 : vector<8x16xf32>
    %c0_257 = arith.constant 0 : index
    %c2_258 = arith.constant 2 : index
    %c4_259 = arith.constant 4 : index
    %c0_260 = arith.constant 0 : index
    %c3_261 = arith.constant 3 : index
    %213 = vector.load %arg2[%c0_257, %c2_258, %c4_259, %c0_260, %c3_261] : memref<1x4x8x8x23xf32, #tpu.memory_space<vmem>>, vector<1x1x1x8x16xf32>
    %214 = vector.shape_cast %213 : vector<1x1x1x8x16xf32> to vector<8x16xf32>
    %215 = arith.mulf %196, %214 : vector<8x16xf32>
    %216 = arith.addf %180, %215 : vector<8x16xf32>
    %c0_262 = arith.constant 0 : index
    %c3_263 = arith.constant 3 : index
    %c4_264 = arith.constant 4 : index
    %c0_265 = arith.constant 0 : index
    %c0_266 = arith.constant 0 : index
    %217 = vector.load %arg2[%c0_262, %c3_263, %c4_264, %c0_265, %c0_266] : memref<1x4x8x8x23xf32, #tpu.memory_space<vmem>>, vector<1x1x1x8x16xf32>
    %218 = vector.shape_cast %217 : vector<1x1x1x8x16xf32> to vector<8x16xf32>
    %219 = arith.mulf %192, %218 : vector<8x16xf32>
    %220 = arith.addf %184, %219 : vector<8x16xf32>
    %c0_267 = arith.constant 0 : index
    %c3_268 = arith.constant 3 : index
    %c4_269 = arith.constant 4 : index
    %c0_270 = arith.constant 0 : index
    %c3_271 = arith.constant 3 : index
    %221 = vector.load %arg2[%c0_267, %c3_268, %c4_269, %c0_270, %c3_271] : memref<1x4x8x8x23xf32, #tpu.memory_space<vmem>>, vector<1x1x1x8x16xf32>
    %222 = vector.shape_cast %221 : vector<1x1x1x8x16xf32> to vector<8x16xf32>
    %223 = arith.mulf %196, %222 : vector<8x16xf32>
    %224 = arith.addf %188, %223 : vector<8x16xf32>
    %c0_272 = arith.constant 0 : index
    %c0_273 = arith.constant 0 : index
    %c5_274 = arith.constant 5 : index
    %c0_275 = arith.constant 0 : index
    %c0_276 = arith.constant 0 : index
    %225 = vector.load %arg2[%c0_272, %c0_273, %c5_274, %c0_275, %c0_276] : memref<1x4x8x8x23xf32, #tpu.memory_space<vmem>>, vector<1x1x1x8x16xf32>
    %226 = vector.shape_cast %225 : vector<1x1x1x8x16xf32> to vector<8x16xf32>
    %227 = arith.subf %226, %42 : vector<8x16xf32>
    %228 = math.exp %227 : vector<8x16xf32>
    %c0_277 = arith.constant 0 : index
    %c0_278 = arith.constant 0 : index
    %c5_279 = arith.constant 5 : index
    %c0_280 = arith.constant 0 : index
    %c2_281 = arith.constant 2 : index
    %229 = vector.load %arg2[%c0_277, %c0_278, %c5_279, %c0_280, %c2_281] : memref<1x4x8x8x23xf32, #tpu.memory_space<vmem>>, vector<1x1x1x8x16xf32>
    %230 = vector.shape_cast %229 : vector<1x1x1x8x16xf32> to vector<8x16xf32>
    %231 = arith.subf %230, %45 : vector<8x16xf32>
    %232 = math.exp %231 : vector<8x16xf32>
    %233 = arith.addf %197, %199 : vector<8x16xf32>
    %234 = arith.addf %198, %200 : vector<8x16xf32>
    %235 = arith.addf %199, %228 : vector<8x16xf32>
    %236 = arith.addf %200, %232 : vector<8x16xf32>
    %c0_282 = arith.constant 0 : index
    %c1_283 = arith.constant 1 : index
    %c5_284 = arith.constant 5 : index
    %c0_285 = arith.constant 0 : index
    %c0_286 = arith.constant 0 : index
    %237 = vector.load %arg2[%c0_282, %c1_283, %c5_284, %c0_285, %c0_286] : memref<1x4x8x8x23xf32, #tpu.memory_space<vmem>>, vector<1x1x1x8x16xf32>
    %238 = vector.shape_cast %237 : vector<1x1x1x8x16xf32> to vector<8x16xf32>
    %239 = arith.mulf %228, %238 : vector<8x16xf32>
    %240 = arith.addf %204, %239 : vector<8x16xf32>
    %c0_287 = arith.constant 0 : index
    %c1_288 = arith.constant 1 : index
    %c5_289 = arith.constant 5 : index
    %c0_290 = arith.constant 0 : index
    %c2_291 = arith.constant 2 : index
    %241 = vector.load %arg2[%c0_287, %c1_288, %c5_289, %c0_290, %c2_291] : memref<1x4x8x8x23xf32, #tpu.memory_space<vmem>>, vector<1x1x1x8x16xf32>
    %242 = vector.shape_cast %241 : vector<1x1x1x8x16xf32> to vector<8x16xf32>
    %243 = arith.mulf %232, %242 : vector<8x16xf32>
    %244 = arith.addf %208, %243 : vector<8x16xf32>
    %c0_292 = arith.constant 0 : index
    %c2_293 = arith.constant 2 : index
    %c5_294 = arith.constant 5 : index
    %c0_295 = arith.constant 0 : index
    %c0_296 = arith.constant 0 : index
    %245 = vector.load %arg2[%c0_292, %c2_293, %c5_294, %c0_295, %c0_296] : memref<1x4x8x8x23xf32, #tpu.memory_space<vmem>>, vector<1x1x1x8x16xf32>
    %246 = vector.shape_cast %245 : vector<1x1x1x8x16xf32> to vector<8x16xf32>
    %247 = arith.mulf %228, %246 : vector<8x16xf32>
    %248 = arith.addf %212, %247 : vector<8x16xf32>
    %c0_297 = arith.constant 0 : index
    %c2_298 = arith.constant 2 : index
    %c5_299 = arith.constant 5 : index
    %c0_300 = arith.constant 0 : index
    %c2_301 = arith.constant 2 : index
    %249 = vector.load %arg2[%c0_297, %c2_298, %c5_299, %c0_300, %c2_301] : memref<1x4x8x8x23xf32, #tpu.memory_space<vmem>>, vector<1x1x1x8x16xf32>
    %250 = vector.shape_cast %249 : vector<1x1x1x8x16xf32> to vector<8x16xf32>
    %251 = arith.mulf %232, %250 : vector<8x16xf32>
    %252 = arith.addf %216, %251 : vector<8x16xf32>
    %c0_302 = arith.constant 0 : index
    %c3_303 = arith.constant 3 : index
    %c5_304 = arith.constant 5 : index
    %c0_305 = arith.constant 0 : index
    %c0_306 = arith.constant 0 : index
    %253 = vector.load %arg2[%c0_302, %c3_303, %c5_304, %c0_305, %c0_306] : memref<1x4x8x8x23xf32, #tpu.memory_space<vmem>>, vector<1x1x1x8x16xf32>
    %254 = vector.shape_cast %253 : vector<1x1x1x8x16xf32> to vector<8x16xf32>
    %255 = arith.mulf %228, %254 : vector<8x16xf32>
    %256 = arith.addf %220, %255 : vector<8x16xf32>
    %c0_307 = arith.constant 0 : index
    %c3_308 = arith.constant 3 : index
    %c5_309 = arith.constant 5 : index
    %c0_310 = arith.constant 0 : index
    %c2_311 = arith.constant 2 : index
    %257 = vector.load %arg2[%c0_307, %c3_308, %c5_309, %c0_310, %c2_311] : memref<1x4x8x8x23xf32, #tpu.memory_space<vmem>>, vector<1x1x1x8x16xf32>
    %258 = vector.shape_cast %257 : vector<1x1x1x8x16xf32> to vector<8x16xf32>
    %259 = arith.mulf %232, %258 : vector<8x16xf32>
    %260 = arith.addf %224, %259 : vector<8x16xf32>
    %c0_312 = arith.constant 0 : index
    %c0_313 = arith.constant 0 : index
    %c6_314 = arith.constant 6 : index
    %c0_315 = arith.constant 0 : index
    %c0_316 = arith.constant 0 : index
    %261 = vector.load %arg2[%c0_312, %c0_313, %c6_314, %c0_315, %c0_316] : memref<1x4x8x8x23xf32, #tpu.memory_space<vmem>>, vector<1x1x1x8x16xf32>
    %262 = vector.shape_cast %261 : vector<1x1x1x8x16xf32> to vector<8x16xf32>
    %263 = arith.subf %262, %42 : vector<8x16xf32>
    %264 = math.exp %263 : vector<8x16xf32>
    %c0_317 = arith.constant 0 : index
    %c0_318 = arith.constant 0 : index
    %c6_319 = arith.constant 6 : index
    %c0_320 = arith.constant 0 : index
    %c1_321 = arith.constant 1 : index
    %265 = vector.load %arg2[%c0_317, %c0_318, %c6_319, %c0_320, %c1_321] : memref<1x4x8x8x23xf32, #tpu.memory_space<vmem>>, vector<1x1x1x8x16xf32>
    %266 = vector.shape_cast %265 : vector<1x1x1x8x16xf32> to vector<8x16xf32>
    %267 = arith.subf %266, %45 : vector<8x16xf32>
    %268 = math.exp %267 : vector<8x16xf32>
    %269 = arith.addf %233, %235 : vector<8x16xf32>
    %270 = arith.addf %234, %236 : vector<8x16xf32>
    %271 = arith.addf %235, %264 : vector<8x16xf32>
    %272 = arith.addf %236, %268 : vector<8x16xf32>
    %c0_322 = arith.constant 0 : index
    %c1_323 = arith.constant 1 : index
    %c6_324 = arith.constant 6 : index
    %c0_325 = arith.constant 0 : index
    %c0_326 = arith.constant 0 : index
    %273 = vector.load %arg2[%c0_322, %c1_323, %c6_324, %c0_325, %c0_326] : memref<1x4x8x8x23xf32, #tpu.memory_space<vmem>>, vector<1x1x1x8x16xf32>
    %274 = vector.shape_cast %273 : vector<1x1x1x8x16xf32> to vector<8x16xf32>
    %275 = arith.mulf %264, %274 : vector<8x16xf32>
    %276 = arith.addf %240, %275 : vector<8x16xf32>
    %c0_327 = arith.constant 0 : index
    %c1_328 = arith.constant 1 : index
    %c6_329 = arith.constant 6 : index
    %c0_330 = arith.constant 0 : index
    %c1_331 = arith.constant 1 : index
    %277 = vector.load %arg2[%c0_327, %c1_328, %c6_329, %c0_330, %c1_331] : memref<1x4x8x8x23xf32, #tpu.memory_space<vmem>>, vector<1x1x1x8x16xf32>
    %278 = vector.shape_cast %277 : vector<1x1x1x8x16xf32> to vector<8x16xf32>
    %279 = arith.mulf %268, %278 : vector<8x16xf32>
    %280 = arith.addf %244, %279 : vector<8x16xf32>
    %c0_332 = arith.constant 0 : index
    %c2_333 = arith.constant 2 : index
    %c6_334 = arith.constant 6 : index
    %c0_335 = arith.constant 0 : index
    %c0_336 = arith.constant 0 : index
    %281 = vector.load %arg2[%c0_332, %c2_333, %c6_334, %c0_335, %c0_336] : memref<1x4x8x8x23xf32, #tpu.memory_space<vmem>>, vector<1x1x1x8x16xf32>
    %282 = vector.shape_cast %281 : vector<1x1x1x8x16xf32> to vector<8x16xf32>
    %283 = arith.mulf %264, %282 : vector<8x16xf32>
    %284 = arith.addf %248, %283 : vector<8x16xf32>
    %c0_337 = arith.constant 0 : index
    %c2_338 = arith.constant 2 : index
    %c6_339 = arith.constant 6 : index
    %c0_340 = arith.constant 0 : index
    %c1_341 = arith.constant 1 : index
    %285 = vector.load %arg2[%c0_337, %c2_338, %c6_339, %c0_340, %c1_341] : memref<1x4x8x8x23xf32, #tpu.memory_space<vmem>>, vector<1x1x1x8x16xf32>
    %286 = vector.shape_cast %285 : vector<1x1x1x8x16xf32> to vector<8x16xf32>
    %287 = arith.mulf %268, %286 : vector<8x16xf32>
    %288 = arith.addf %252, %287 : vector<8x16xf32>
    %c0_342 = arith.constant 0 : index
    %c3_343 = arith.constant 3 : index
    %c6_344 = arith.constant 6 : index
    %c0_345 = arith.constant 0 : index
    %c0_346 = arith.constant 0 : index
    %289 = vector.load %arg2[%c0_342, %c3_343, %c6_344, %c0_345, %c0_346] : memref<1x4x8x8x23xf32, #tpu.memory_space<vmem>>, vector<1x1x1x8x16xf32>
    %290 = vector.shape_cast %289 : vector<1x1x1x8x16xf32> to vector<8x16xf32>
    %291 = arith.mulf %264, %290 : vector<8x16xf32>
    %292 = arith.addf %256, %291 : vector<8x16xf32>
    %c0_347 = arith.constant 0 : index
    %c3_348 = arith.constant 3 : index
    %c6_349 = arith.constant 6 : index
    %c0_350 = arith.constant 0 : index
    %c1_351 = arith.constant 1 : index
    %293 = vector.load %arg2[%c0_347, %c3_348, %c6_349, %c0_350, %c1_351] : memref<1x4x8x8x23xf32, #tpu.memory_space<vmem>>, vector<1x1x1x8x16xf32>
    %294 = vector.shape_cast %293 : vector<1x1x1x8x16xf32> to vector<8x16xf32>
    %295 = arith.mulf %268, %294 : vector<8x16xf32>
    %296 = arith.addf %260, %295 : vector<8x16xf32>
    %c0_352 = arith.constant 0 : index
    %c0_353 = arith.constant 0 : index
    %c7_354 = arith.constant 7 : index
    %c0_355 = arith.constant 0 : index
    %c0_356 = arith.constant 0 : index
    %297 = vector.load %arg2[%c0_352, %c0_353, %c7_354, %c0_355, %c0_356] : memref<1x4x8x8x23xf32, #tpu.memory_space<vmem>>, vector<1x1x1x8x16xf32>
    %298 = vector.shape_cast %297 : vector<1x1x1x8x16xf32> to vector<8x16xf32>
    %299 = arith.subf %298, %42 : vector<8x16xf32>
    %300 = math.exp %299 : vector<8x16xf32>
    %c0_357 = arith.constant 0 : index
    %c0_358 = arith.constant 0 : index
    %c7_359 = arith.constant 7 : index
    %c0_360 = arith.constant 0 : index
    %c0_361 = arith.constant 0 : index
    %301 = vector.load %arg2[%c0_357, %c0_358, %c7_359, %c0_360, %c0_361] : memref<1x4x8x8x23xf32, #tpu.memory_space<vmem>>, vector<1x1x1x8x16xf32>
    %302 = vector.shape_cast %301 : vector<1x1x1x8x16xf32> to vector<8x16xf32>
    %303 = arith.subf %302, %45 : vector<8x16xf32>
    %304 = math.exp %303 : vector<8x16xf32>
    %305 = arith.addf %269, %271 : vector<8x16xf32>
    %306 = arith.addf %270, %272 : vector<8x16xf32>
    %307 = arith.addf %271, %300 : vector<8x16xf32>
    %308 = arith.addf %272, %304 : vector<8x16xf32>
    %c0_362 = arith.constant 0 : index
    %c1_363 = arith.constant 1 : index
    %c7_364 = arith.constant 7 : index
    %c0_365 = arith.constant 0 : index
    %c0_366 = arith.constant 0 : index
    %309 = vector.load %arg2[%c0_362, %c1_363, %c7_364, %c0_365, %c0_366] : memref<1x4x8x8x23xf32, #tpu.memory_space<vmem>>, vector<1x1x1x8x16xf32>
    %310 = vector.shape_cast %309 : vector<1x1x1x8x16xf32> to vector<8x16xf32>
    %311 = arith.mulf %300, %310 : vector<8x16xf32>
    %312 = arith.addf %276, %311 : vector<8x16xf32>
    %c0_367 = arith.constant 0 : index
    %c1_368 = arith.constant 1 : index
    %c7_369 = arith.constant 7 : index
    %c0_370 = arith.constant 0 : index
    %c0_371 = arith.constant 0 : index
    %313 = vector.load %arg2[%c0_367, %c1_368, %c7_369, %c0_370, %c0_371] : memref<1x4x8x8x23xf32, #tpu.memory_space<vmem>>, vector<1x1x1x8x16xf32>
    %314 = vector.shape_cast %313 : vector<1x1x1x8x16xf32> to vector<8x16xf32>
    %315 = arith.mulf %304, %314 : vector<8x16xf32>
    %316 = arith.addf %280, %315 : vector<8x16xf32>
    %c0_372 = arith.constant 0 : index
    %c2_373 = arith.constant 2 : index
    %c7_374 = arith.constant 7 : index
    %c0_375 = arith.constant 0 : index
    %c0_376 = arith.constant 0 : index
    %317 = vector.load %arg2[%c0_372, %c2_373, %c7_374, %c0_375, %c0_376] : memref<1x4x8x8x23xf32, #tpu.memory_space<vmem>>, vector<1x1x1x8x16xf32>
    %318 = vector.shape_cast %317 : vector<1x1x1x8x16xf32> to vector<8x16xf32>
    %319 = arith.mulf %300, %318 : vector<8x16xf32>
    %320 = arith.addf %284, %319 : vector<8x16xf32>
    %c0_377 = arith.constant 0 : index
    %c2_378 = arith.constant 2 : index
    %c7_379 = arith.constant 7 : index
    %c0_380 = arith.constant 0 : index
    %c0_381 = arith.constant 0 : index
    %321 = vector.load %arg2[%c0_377, %c2_378, %c7_379, %c0_380, %c0_381] : memref<1x4x8x8x23xf32, #tpu.memory_space<vmem>>, vector<1x1x1x8x16xf32>
    %322 = vector.shape_cast %321 : vector<1x1x1x8x16xf32> to vector<8x16xf32>
    %323 = arith.mulf %304, %322 : vector<8x16xf32>
    %324 = arith.addf %288, %323 : vector<8x16xf32>
    %c0_382 = arith.constant 0 : index
    %c3_383 = arith.constant 3 : index
    %c7_384 = arith.constant 7 : index
    %c0_385 = arith.constant 0 : index
    %c0_386 = arith.constant 0 : index
    %325 = vector.load %arg2[%c0_382, %c3_383, %c7_384, %c0_385, %c0_386] : memref<1x4x8x8x23xf32, #tpu.memory_space<vmem>>, vector<1x1x1x8x16xf32>
    %326 = vector.shape_cast %325 : vector<1x1x1x8x16xf32> to vector<8x16xf32>
    %327 = arith.mulf %300, %326 : vector<8x16xf32>
    %328 = arith.addf %292, %327 : vector<8x16xf32>
    %c0_387 = arith.constant 0 : index
    %c3_388 = arith.constant 3 : index
    %c7_389 = arith.constant 7 : index
    %c0_390 = arith.constant 0 : index
    %c0_391 = arith.constant 0 : index
    %329 = vector.load %arg2[%c0_387, %c3_388, %c7_389, %c0_390, %c0_391] : memref<1x4x8x8x23xf32, #tpu.memory_space<vmem>>, vector<1x1x1x8x16xf32>
    %330 = vector.shape_cast %329 : vector<1x1x1x8x16xf32> to vector<8x16xf32>
    %331 = arith.mulf %304, %330 : vector<8x16xf32>
    %332 = arith.addf %296, %331 : vector<8x16xf32>
    %333 = tpu.reciprocal %307 {approx = true} : vector<8x16xf32> -> vector<8x16xf32>
    %334 = arith.mulf %307, %333 : vector<8x16xf32>
    %cst_392 = arith.constant 2.000000e+00 : f32
    %335 = vector.broadcast %cst_392 : f32 to vector<8x16xf32>
    %336 = arith.subf %335, %334 : vector<8x16xf32>
    %337 = arith.mulf %333, %336 : vector<8x16xf32>
    %338 = tpu.reciprocal %308 {approx = true} : vector<8x16xf32> -> vector<8x16xf32>
    %339 = arith.mulf %308, %338 : vector<8x16xf32>
    %cst_393 = arith.constant 2.000000e+00 : f32
    %340 = vector.broadcast %cst_393 : f32 to vector<8x16xf32>
    %341 = arith.subf %340, %339 : vector<8x16xf32>
    %342 = arith.mulf %338, %341 : vector<8x16xf32>
    %343 = arith.mulf %305, %337 : vector<8x16xf32>
    %c0_394 = arith.constant 0 : index
    %c0_395 = arith.constant 0 : index
    %c0_396 = arith.constant 0 : index
    %344 = vector.load %arg5[%c0_394, %c0_395, %c0_396] : memref<1x8x16xf32, #tpu.memory_space<vmem>>, vector<1x8x16xf32>
    %345 = vector.shape_cast %344 : vector<1x8x16xf32> to vector<8x16xf32>
    %346 = vector.shape_cast %343 : vector<8x16xf32> to vector<1x8x16xf32>
    tpu.vector_store %arg5[%c0_394, %c0_395, %c0_396], %346 {strides = array<i32>} : memref<1x8x16xf32, #tpu.memory_space<vmem>>, vector<1x8x16xf32>,
    %347 = arith.mulf %306, %342 : vector<8x16xf32>
    %c0_397 = arith.constant 0 : index
    %c0_398 = arith.constant 0 : index
    %c0_399 = arith.constant 0 : index
    %348 = vector.load %arg6[%c0_397, %c0_398, %c0_399] : memref<1x8x16xf32, #tpu.memory_space<vmem>>, vector<1x8x16xf32>
    %349 = vector.shape_cast %348 : vector<1x8x16xf32> to vector<8x16xf32>
    %350 = vector.shape_cast %347 : vector<8x16xf32> to vector<1x8x16xf32>
    tpu.vector_store %arg6[%c0_397, %c0_398, %c0_399], %350 {strides = array<i32>} : memref<1x8x16xf32, #tpu.memory_space<vmem>>, vector<1x8x16xf32>,
    %351 = arith.mulf %312, %337 : vector<8x16xf32>
    %c0_400 = arith.constant 0 : index
    %c0_401 = arith.constant 0 : index
    %c0_402 = arith.constant 0 : index
    %c0_403 = arith.constant 0 : index
    %352 = vector.load %arg3[%c0_400, %c0_401, %c0_402, %c0_403] : memref<1x3x8x16xf32, #tpu.memory_space<vmem>>, vector<1x1x8x16xf32>
    %353 = vector.shape_cast %352 : vector<1x1x8x16xf32> to vector<8x16xf32>
    %354 = vector.shape_cast %351 : vector<8x16xf32> to vector<1x1x8x16xf32>
    tpu.vector_store %arg3[%c0_400, %c0_401, %c0_402, %c0_403], %354 {strides = array<i32>} : memref<1x3x8x16xf32, #tpu.memory_space<vmem>>, vector<1x1x8x16xf32>,
    %355 = arith.mulf %316, %342 : vector<8x16xf32>
    %c0_404 = arith.constant 0 : index
    %c0_405 = arith.constant 0 : index
    %c0_406 = arith.constant 0 : index
    %c0_407 = arith.constant 0 : index
    %356 = vector.load %arg4[%c0_404, %c0_405, %c0_406, %c0_407] : memref<1x3x8x16xf32, #tpu.memory_space<vmem>>, vector<1x1x8x16xf32>
    %357 = vector.shape_cast %356 : vector<1x1x8x16xf32> to vector<8x16xf32>
    %358 = vector.shape_cast %355 : vector<8x16xf32> to vector<1x1x8x16xf32>
    tpu.vector_store %arg4[%c0_404, %c0_405, %c0_406, %c0_407], %358 {strides = array<i32>} : memref<1x3x8x16xf32, #tpu.memory_space<vmem>>, vector<1x1x8x16xf32>,
    %359 = arith.mulf %320, %337 : vector<8x16xf32>
    %c0_408 = arith.constant 0 : index
    %c1_409 = arith.constant 1 : index
    %c0_410 = arith.constant 0 : index
    %c0_411 = arith.constant 0 : index
    %360 = vector.load %arg3[%c0_408, %c1_409, %c0_410, %c0_411] : memref<1x3x8x16xf32, #tpu.memory_space<vmem>>, vector<1x1x8x16xf32>
    %361 = vector.shape_cast %360 : vector<1x1x8x16xf32> to vector<8x16xf32>
    %362 = vector.shape_cast %359 : vector<8x16xf32> to vector<1x1x8x16xf32>
    tpu.vector_store %arg3[%c0_408, %c1_409, %c0_410, %c0_411], %362 {strides = array<i32>} : memref<1x3x8x16xf32, #tpu.memory_space<vmem>>, vector<1x1x8x16xf32>,
    %363 = arith.mulf %324, %342 : vector<8x16xf32>
    %c0_412 = arith.constant 0 : index
    %c1_413 = arith.constant 1 : index
    %c0_414 = arith.constant 0 : index
    %c0_415 = arith.constant 0 : index
    %364 = vector.load %arg4[%c0_412, %c1_413, %c0_414, %c0_415] : memref<1x3x8x16xf32, #tpu.memory_space<vmem>>, vector<1x1x8x16xf32>
    %365 = vector.shape_cast %364 : vector<1x1x8x16xf32> to vector<8x16xf32>
    %366 = vector.shape_cast %363 : vector<8x16xf32> to vector<1x1x8x16xf32>
    tpu.vector_store %arg4[%c0_412, %c1_413, %c0_414, %c0_415], %366 {strides = array<i32>} : memref<1x3x8x16xf32, #tpu.memory_space<vmem>>, vector<1x1x8x16xf32>,
    %367 = arith.mulf %328, %337 : vector<8x16xf32>
    %c0_416 = arith.constant 0 : index
    %c2_417 = arith.constant 2 : index
    %c0_418 = arith.constant 0 : index
    %c0_419 = arith.constant 0 : index
    %368 = vector.load %arg3[%c0_416, %c2_417, %c0_418, %c0_419] : memref<1x3x8x16xf32, #tpu.memory_space<vmem>>, vector<1x1x8x16xf32>
    %369 = vector.shape_cast %368 : vector<1x1x8x16xf32> to vector<8x16xf32>
    %370 = vector.shape_cast %367 : vector<8x16xf32> to vector<1x1x8x16xf32>
    tpu.vector_store %arg3[%c0_416, %c2_417, %c0_418, %c0_419], %370 {strides = array<i32>} : memref<1x3x8x16xf32, #tpu.memory_space<vmem>>, vector<1x1x8x16xf32>,
    %371 = arith.mulf %332, %342 : vector<8x16xf32>
    %c0_420 = arith.constant 0 : index
    %c2_421 = arith.constant 2 : index
    %c0_422 = arith.constant 0 : index
    %c0_423 = arith.constant 0 : index
    %372 = vector.load %arg4[%c0_420, %c2_421, %c0_422, %c0_423] : memref<1x3x8x16xf32, #tpu.memory_space<vmem>>, vector<1x1x8x16xf32>
    %373 = vector.shape_cast %372 : vector<1x1x8x16xf32> to vector<8x16xf32>
    %374 = vector.shape_cast %371 : vector<8x16xf32> to vector<1x1x8x16xf32>
    tpu.vector_store %arg4[%c0_420, %c2_421, %c0_422, %c0_423], %374 {strides = array<i32>} : memref<1x3x8x16xf32, #tpu.memory_space<vmem>>, vector<1x1x8x16xf32>,
    return
  }
  func.func @transform_0(%arg0: i32, %arg1: i32) -> (i32, i32, i32, i32, i32) {
    %c0_i32 = arith.constant 0 : i32
    %c0_i32_0 = arith.constant 0 : i32
    %c0_i32_1 = arith.constant 0 : i32
    %c0_i32_2 = arith.constant 0 : i32
    return %arg0, %c0_i32, %c0_i32_0, %arg1, %c0_i32_1 : i32, i32, i32, i32, i32
  }
  func.func @transform_1(%arg0: i32, %arg1: i32) -> (i32, i32, i32, i32) {
    %c0_i32 = arith.constant 0 : i32
    %c0_i32_0 = arith.constant 0 : i32
    %c0_i32_1 = arith.constant 0 : i32
    return %arg0, %c0_i32, %arg1, %c0_i32_0 : i32, i32, i32, i32
  }
  func.func @transform_2(%arg0: i32, %arg1: i32) -> (i32, i32, i32, i32) {
    %c0_i32 = arith.constant 0 : i32
    %c0_i32_0 = arith.constant 0 : i32
    %c0_i32_1 = arith.constant 0 : i32
    return %arg0, %c0_i32, %arg1, %c0_i32_0 : i32, i32, i32, i32
  }
  func.func @transform_3(%arg0: i32, %arg1: i32) -> (i32, i32, i32) {
    %c0_i32 = arith.constant 0 : i32
    %c0_i32_0 = arith.constant 0 : i32
    return %arg0, %arg1, %c0_i32 : i32, i32, i32
  }
  func.func @transform_4(%arg0: i32, %arg1: i32) -> (i32, i32, i32) {
    %c0_i32 = arith.constant 0 : i32
    %c0_i32_0 = arith.constant 0 : i32
    return %arg0, %arg1, %c0_i32 : i32, i32, i32
  }
}

</mosaic_0001>

<bundles_post_ra>
// kernel: tpu_custom_call.1
= control target key start
LH: loop header
LB: loop body
LE: loop exit
PB: predicated region body
PF: predicated region fallthrough
CT: control target
= control target key end

     0   :  { %10 = vsyncpa [#allocation3], 0  ;;  %s2038_s0 = inlined_call_operand.hbm [shape: f32[2,4,8,16,23], index: 0, kind: input, shape index: {}]   ;;  %s2039_s1 = inlined_call_operand.hbm [shape: f32[2,3,16,16], index: 1, kind: output, shape index: {0}]   ;;  %s2040_s2 = inlined_call_operand.hbm [shape: f32[2,3,16,16], index: 2, kind: output, shape index: {1}]   ;;  %s2041_s3 = inlined_call_operand.hbm [shape: f32[2,16,16], index: 3, kind: output, shape index: {2}]   ;;  %s2042_s4 = inlined_call_operand.hbm [shape: f32[2,16,16], index: 4, kind: output, shape index: {3}]  }
   0x1   :  { %12 = vsyncpa [#allocation3 + $0x1], 0 }
   0x2   :  { %13 = vsyncpa [#allocation4], 0 }
   0x3   :  { %15 = vsyncpa [#allocation4 + $0x1], 0 }
   0x4   :  { %16 = vsyncpa [#allocation7], 0 }
   0x5   :  { %18 = vsyncpa [#allocation7 + $0x1], 0 }
   0x6   :  { %19 = vsyncpa [#allocation10], 0 }
   0x7   :  { %21 = vsyncpa [#allocation10 + $0x1], 0  ;;  %s1469_s15 = smov 0   ;;  %s1471_s16 = smov 0  }
   0x8   :  { %s1473_s17 = smov 0   ;;  %s1475_s18 = smov 0  }
   0x9   :  { %s1477_s19 = smov 0   ;;  %s1479_s20 = smov 0  }
   0xa   :  { %s1481_s21 = smov 0   ;;  %s1483_s22 = smov 0  }
   0xb LB: > { %2056 = sst [smem:[#allocation15_spill]] %s1389_s15  ;;  %s1510_s23 = sadd.s32 4294967295, %s1417_s22   ;;  %s1417_s22 = sphi %s1483_s22, %s27_s22   ;;  %s1413_s21 = sphi %s1481_s21, %s2083_s21   ;;  %s1409_s20 = sphi %s1479_s20, %s2082_s20   ;;  %s1405_s19 = sphi %s1477_s19, %s2081_s19   ;;  %s1401_s18 = sphi %s1475_s18, %s2080_s18   ;;  %s1397_s17 = sphi %s1473_s17, %s2079_s17   ;;  %s1393_s16 = sphi %s1471_s16, %s2078_s16   ;;  %s1389_s15 = sphi %s1469_s15, %s2077_s15  }
   0xc   : > { %s2046_s24 = sadd.s32 4294967294, %s1417_s22   ;;  %s36_s25 = sadd.s32 1, %s1409_s20 }
   0xd   : > { %s39_s26 = sadd.s32 1, %s1413_s21  ;;  %p37_p0 = scmp.ge.s32.totalorder %s36_s25, 2 }
   0xe   : > { %s48_s27 = sadd.s32 1, %s1397_s17  ;;  %p55_p1 = scmp.ne.s32.totalorder %s1397_s17, %s1393_s16 }
   0xf   : > { %p56_p2 = scmp.eq.s32.totalorder %s1417_s22, 0  ;;  %s2085_s25 = smov (%p37_p0, %s36_s25), 0 }
  0x10   : > { %2057 = sst [smem:[#allocation16_spill]] %s2085_s25  ;;  %s2087_s26 = smov (!%p37_p0, %s39_s26), %s1413_s21 }
  0x11   : > { %s44_s28 = ssub.s32 %s1409_s20, %s2085_s25  ;;  %p1524_p3 = por %p56_p2, %p55_p1 }
  0x12   : > { %p41_p4 = scmp.ge.s32.totalorder %s2087_s26, 2  ;;  %p61_p5 = scmp.ne.s32.totalorder %s1393_s16, %s1389_s15 }
  0x13   : > { %p62_p6 = scmp.eq.s32.totalorder %s1510_s23, 0  ;;  %p87_p7 = scmp.eq.s32.totalorder %s1510_s23, 3 }
  0x14   : > { %s2089_s26 = smov (%p41_p4, %s2087_s26), 0  ;;  %p93_p10 = scmp.eq.s32.totalorder %s2046_s24, 3 }
  0x15   : > { %2059 = sst [smem:[#allocation17_spill]] %s2089_s26  ;;  %p1534_p8 = por %p62_p6, %p61_p5 }
  0x16   : > { %p1538_p9 = por %p87_p7, %p55_p1  ;;  %s43_s6 = ssub.s32 %s1413_s21, %s2089_s26 }
  0x17   : > { %s45_s7 = sor.u32 %s44_s28, %s43_s6  ;;  %p1546_p12 = por %p93_p10, %p61_p5 }
  0x18   : > { %s2061_s5 = scalar_select %p1538_p9, 1, 0 }
  0x19   : > { %p46_p11 = scmp.eq.s32.totalorder %s45_s7, 0  ;;  %p1075_p13 = scmp.lt.s32.totalorder %s1417_s22, 4 }
  0x1a   : > { %s2062_s8 = scalar_select %p1546_p12, 1, 0 }
  0x1b   : > { %s197_s9 = sand.u32 1, %s1397_s17   ;;  %s994_s12 = sshll.u32 %s1413_s21, 6 }
  0x1c   : > { %s1553_s10 = scalar_select %p46_p11, %s1397_s17, %s48_s27  }
  0x1d   : > { %s993_s11 = sshll.u32 %s197_s9, 8  ;;  %s206_s13 = sadd.s32 %s1409_s20, %s994_s12 }
  0x1e   : > { %s201_s14 = scalar_lea.vmem [#allocation2], %s993_s11  ;;  %s995_s15 = sshll.u32 %s206_s13, 7 }
  0x1f   : > { %s209_s25 = sshll.u32 %s201_s14, 4  ;;  %s1562_s28 = scalar_lea.hbm %s2038_s0, %s995_s15  ;;  %s1557_s25 = int_to_ptr.vmem [resolvable:$true] %s209_s25 }
  0x20   : > { %p1566_p0 = pnand %p1075_p13, %p1524_p3  ;;  %s1570_s6 = scalar_lea.sflag [#allocation3], %s197_s9 }
  0x21   : > { %s1197_s7 = scalar_lea.hbm %s1562_s28, 4096  ;;  %s1202_s26 = scalar_lea.hbm %s2038_s0, 16384 }
  0x22   : > { %p1198_p1 = scmp.ne.s32.totalorder %s1562_s28, %s1197_s7  ;;  %p1199_p2 = pneg %p1566_p0 }
  0x23   : > { %p1203_p3 = scmp.lt.u32.totalorder %s1562_s28, %s2038_s0  ;;  %p1204_p6 = scmp.lt.u32.totalorder %s1202_s26, %s1197_s7 }
  0x24   : > { %p1200_p4 = pnand %p1199_p2, %p1198_p1  ;;  %p1206_p10 = scmp.lt.u32.totalorder %s1197_s7, %s1562_s28 }
  0x25   : > { %p1205_p7 = por %p1204_p6, %p1203_p3 }
  0x26   : > { %p1201_p5 = pneg %p1200_p4 }
  0x27   : > { %p1207_p11 = por %p1206_p10, %p1205_p7 }
  0x29   : > { %p1208_p13 = pnand %p1207_p11, %p1201_p5 }
  0x2b   : > { %1211 = shalt.err (!%p1208_p13)
}
  0x2c   : > { %s1212_s9 = scalar_lea.vmem %s1557_s25, 4096  ;;  %s1419_s12 = smov [#allocation2]  }
  0x2d   : > { %p1213_p1 = scmp.ne.s32.totalorder %s1557_s25, %s1212_s9  ;;  %s1217_s13 = sshll.u32 %s1419_s12, 4  ;;  %s1218_s13 = int_to_ptr.vmem [resolvable:$false] %s1217_s13 }
  0x2e   : > { %s1219_s14 = scalar_lea.vmem %s1218_s13, 8192  ;;  %p1220_p9 = scmp.lt.s32.totalorder %s1557_s25, %s1218_s13 }
  0x2f   : > { %p1215_p4 = pnand %p1213_p1, %p1199_p2  ;;  %p1221_p3 = scmp.lt.s32.totalorder %s1219_s14, %s1212_s9 }
  0x31   : > { %p1216_p12 = pneg %p1215_p4  ;;  %p1222_p6 = por %p1221_p3, %p1220_p9 }
  0x33   : > { %p1223_p7 = pnand %p1222_p6, %p1216_p12 }
  0x35   : > { %1226 = shalt.err (!%p1223_p7)
}
  0x36   : > { %s1420_s7 = smov 256   ;;  %s1421_s15 = smov 128  }
  0x37   : > { %s1422_s24 = smov 8   ;;  %p996_p2 = scmp.ge.s32.totalorder %s1417_s22, 1 }
  0x38   : > { %1061 = dma.hbm_to_vmem [thread:$0]  (!%p1566_p0), %s1562_s28, 4096, %s1557_s25, %s1570_s6, %s1420_s7, %s1421_s15, %s1422_s24  }
  0x39   : > { %p217_p5 = scmp.lt.s32.totalorder %s1417_s22, 5 }
  0x3b   : > { %p218_p10 = pnand %p996_p2, %p217_p5 }
  0x3c   : > { %s1601_s26 = sand.u32 (!%p218_p10), 1, %s1393_s16  }
  0x3d   : > { %221 = sbr.rel (%p218_p10) target bundleno = 691 (0x2b3), region = 24  ;;  %s997_s29 = sshll.u32 (!%p218_p10), %s1601_s26, 8 }
  0x3e   : > { %s224_s11 = scalar_lea.sflag (!%p218_p10), [#allocation3], %s1601_s26  ;;  %s1605_s9 = scalar_lea.vmem (!%p218_p10), [#allocation2], %s997_s29 }
  0x44   : > { %1372 = dma.done.wait (%p1534_p8), %s224_s11, 4096  }
  0x45   : > { %1374 = vsyncadd (%p1534_p8), %s224_s11, 4294963200  ;;  %v1612_v0 = vld [vmem:[%s1605_s9 + $0x8] sm:$0xff]  ;;  %v1615_v1 = vld [vmem:[%s1605_s9 + $0x18] sm:$0xff]  ;;  %s1423_s25 = smov 1   ;;  %s1424_s28 = smov 3   ;;  %vm689_vm0 = vcmask 130048  }
  0x46   : > { %272 = vrot.lane.b32.xlu0 %v1612_v0, %s1423_s25  ;;  %288 = vrot.lane.b32.xlu1 %v1615_v1, %s1424_s28  ;;  %v1622_v2 = vld [vmem:[%s1605_s9 + $0x10] sm:$0xff]  ;;  %v1625_v3 = vld [vmem:[%s1605_s9 + $0x20] sm:$0xff]  ;;  %s1425_s30 = smov 2   ;;  %s1426_s27 = smov 4  }
  0x47   : > { %v1632_v4 = vld [vmem:[%s1605_s9 + $0x28] sm:$0xff]  ;;  %v1635_v5 = vld [vmem:[%s1605_s9 + $0x30] sm:$0xff]  ;;  %s1427_s6 = smov 5   ;;  %s1428_s12 = smov 6   ;;  %v1642_v6 = vld [vmem:[%s1605_s9 + $0x38] sm:$0xff] }
  0x48   : > { %s2048_s13 = smov 7   ;;  %v1647_v8 = vld [vmem:[%s1605_s9] sm:$0xff]  ;;  %s1430_s14 = smov 126  }
  0x49   : > { %s1431_s7 = smov 127   ;;  %s1432_s15 = smov 124   ;;  %v270_v22 = vmax.f32 %v1647_v8, %v1612_v0 }
  0x4a   : > { %280 = vrot.lane.b32.xlu0 %v1622_v2, %s1425_s30  ;;  %296 = vrot.lane.b32.xlu1 %v1625_v3, %s1426_s27  ;;  %s1433_s24 = smov 125   ;;  %s1434_s29 = smov 122  }
  0x4b   : > { %s1435_s11 = smov 123   ;;  %v278_v23 = vmax.f32 %v270_v22, %v1622_v2  ;;  %p2065_p9 = scmp.ne.s32.totalorder %s2061_s5, 0 }
  0x4d   : > { %v286_v24 = vmax.f32 %v278_v23, %v1615_v1 }
  0x4e   : > { %304 = vrot.lane.b32.xlu0 %v1632_v4, %s1427_s6  ;;  %312 = vrot.lane.b32.xlu1 %v1635_v5, %s1428_s12 }
  0x4f   : > { %v294_v25 = vmax.f32 %v286_v24, %v1625_v3 }
  0x51   : > { %v302_v26 = vmax.f32 %v294_v25, %v1632_v4  ;;  %v1013_v25 = vld [vmem:[%s1605_s9 + $0x50] sm:$0xff] }
  0x52   : > { %320 = vrot.lane.b32.xlu0 %v1642_v6, %s2048_s13  ;;  %s1436_s13 = smov 121  }
  0x53   : > { %v310_v31 = vmax.f32 %v302_v26, %v1635_v5  ;;  %v1721_v26 = vld [vmem:[%s1605_s9 + $0x80] sm:$0xff] }
  0x55   : > { %v318_v38 = vmax.f32 %v310_v31, %v1642_v6 }
  0x57   : > { %v324_v45 = vsub.f32 %v1647_v8, %v318_v38  ;;  %v350_v49 = vsub.f32 %v1612_v0, %v318_v38  ;;  %v398_v51 = vsub.f32 %v1622_v2, %v318_v38  ;;  %v445_v57 = vsub.f32 %v1615_v1, %v318_v38 }
  0x58   : > { %v492_v59 = vsub.f32 %v1625_v3, %v318_v38  ;;  %v539_v63 = vsub.f32 %v1632_v4, %v318_v38 }
  0x59   : > { %v325_v53 = vmul.f32 1.442695, %v324_v45  ;;  %v351_v56 = vmul.f32 1.442695, %v350_v49  ;;  %v399_v58 = vmul.f32 1.442695, %v398_v51 }
  0x5a   : > { %v446_v62 = vmul.f32 1.442695, %v445_v57 }
  0xb8   : > { %v273_v7 = vpop.permute.xlu0 %272  ;;  %v289_v9 = vpop.permute.xlu1 %288 }
  0xb9   : > { %v275_v10 = vmax.f32 %v1647_v8, %v273_v7 }
  0xbc   : > { %v281_v11 = vpop.permute.xlu0 %280  ;;  %v297_v12 = vpop.permute.xlu1 %296 }
  0xbd   : > { %v283_v13 = vmax.f32 %v275_v10, %v281_v11 }
  0xbf   : > { %v291_v14 = vmax.f32 %v283_v13, %v289_v9  ;;  %v540_v9 = vmul.f32 1.442695, %v539_v63  ;;  %v1011_v13 = vld [vmem:[%s1605_s9 + $0x88] sm:$0xff] }
  0xc0   : > { %v305_v15 = vpop.permute.xlu0 %304  ;;  %v313_v17 = vpop.permute.xlu1 %312 }
  0xc1   : > { %v299_v16 = vmax.f32 %v291_v14, %v297_v12  ;;  %v1012_v12 = vld [vmem:[%s1605_s9 + $0xc8] sm:$0xff] }
  0xc3   : > { %v307_v18 = vmax.f32 %v299_v16, %v305_v15 }
  0xc4   : > { %v321_v19 = vpop.permute.xlu0 %320 }
  0xc5   : > { %v315_v20 = vmax.f32 %v307_v18, %v313_v17  ;;  %v1014_v18 = vld [vmem:[%s1605_s9 + $0x90] sm:$0xff] }
  0xc7   : > { %v1650_v21 = vmax.f32 %v315_v20, %v321_v19  ;;  %v1716_v19 = vld [vmem:[%s1605_s9 + $0x40] sm:$0xff] }
  0xc9   : > { %401 = vrot.lane.b32.xlu0 %v1650_v21, %s1430_s14  ;;  %354 = vrot.lane.b32.xlu1 %v1650_v21, %s1431_s7  ;;  %s2064_s14 = smov 7  }
  0xcd   : > { %495 = vrot.lane.b32.xlu0 %v1650_v21, %s1432_s15  ;;  %448 = vrot.lane.b32.xlu1 %v1650_v21, %s1433_s24 }
  0xd1   : > { %589 = vrot.lane.b32.xlu0 %v1650_v21, %s1434_s29  ;;  %542 = vrot.lane.b32.xlu1 %v1650_v21, %s1435_s11  ;;  %s726_s11 = scalar_lea.sflag [#allocation4], %s1601_s26 }
  0xd5   : > { %636 = vrot.lane.b32.xlu1 %v1650_v21, %s1436_s13 }
 0x13b   : > { %v402_v27 = vpop.permute.xlu0 %401  ;;  %v355_v28 = vpop.permute.xlu1 %354 }
 0x13c   : > { %v404_v29 = vsub.f32 %v1622_v2, %v402_v27  ;;  %v357_v30 = vsub.f32 %v1612_v0, %v355_v28  ;;  %v493_v0 = vmul.f32 1.442695, %v492_v59  ;;  %v1724_v27 = vld [vmem:[%s1605_s9 + $0xc0] sm:$0xff] }
 0x13e   : > { %v405_v32 = vmul.f32 1.442695, %v404_v29  ;;  %v358_v33 = vmul.f32 1.442695, %v357_v30 }
 0x13f   : > { %v496_v34 = vpop.permute.xlu0 %495  ;;  %v449_v35 = vpop.permute.xlu1 %448 }
 0x140   : > { %1161 = vpow2.f32 %v405_v32  ;;  %v498_v36 = vsub.f32 %v1625_v3, %v496_v34  ;;  %v451_v37 = vsub.f32 %v1615_v1, %v449_v35  ;;  %v586_v1 = vsub.f32 %v1635_v5, %v318_v38  ;;  %v1010_v3 = vld [vmem:[%s1605_s9 + $0x48] sm:$0xff] }
 0x141   : > { %1163 = vpow2.f32 %v358_v33 }
 0x142   : > { %v499_v39 = vmul.f32 1.442695, %v498_v36  ;;  %v452_v40 = vmul.f32 1.442695, %v451_v37  ;;  %v1016_v37 = vld [vmem:[%s1605_s9 + $0x58] sm:$0xff] }
 0x143   : > { %v590_v41 = vpop.permute.xlu0 %589  ;;  %v543_v42 = vpop.permute.xlu1 %542 }
 0x144   : > { %1165 = vpow2.f32 %v499_v39  ;;  %v592_v43 = vsub.f32 %v1635_v5, %v590_v41  ;;  %v545_v44 = vsub.f32 %v1632_v4, %v543_v42  ;;  %v633_v4 = vsub.f32 %v1642_v6, %v318_v38  ;;  %v1015_v38 = vld [vmem:[%s1605_s9 + $0xd0] sm:$0xff] }
 0x145   : > { %1167 = vpow2.f32 %v452_v40  ;;  %v587_v5 = vmul.f32 1.442695, %v586_v1  ;;  %v1019_v1 = vld [vmem:[%s1605_s9 + $0x60] sm:$0xff] }
 0x146   : > { %v593_v46 = vmul.f32 1.442695, %v592_v43  ;;  %v546_v47 = vmul.f32 1.442695, %v545_v44  ;;  %v634_v14 = vmul.f32 1.442695, %v633_v4 }
 0x147   : > { %v637_v48 = vpop.permute.xlu1 %636 }
 0x148   : > { %1169 = vpow2.f32 %v593_v46  ;;  %v639_v50 = vsub.f32 %v1642_v6, %v637_v48  ;;  %v1018_v48 = vld [vmem:[%s1605_s9 + $0xd8] sm:$0xff] }
 0x149   : > { %1171 = vpow2.f32 %v546_v47 }
 0x14a   : > { %v1678_v52 = vpop.eup %1161  ;;  %v640_v54 = vmul.f32 1.442695, %v639_v50 }
 0x14b   : > { %v1164_v55 = vpop.eup %1163  ;;  %411 = vrot.lane.b32.xlu1 %v1678_v52, %s1425_s30  ;;  %v429_v33 = vmul.f32 %v1678_v52, %v1014_v18  ;;  %v419_v35 = vmul.f32 %v1678_v52, %v1013_v25  ;;  %v439_v50 = vmul.f32 %v1678_v52, %v1015_v38 }
 0x14c   : > { %1173 = vpow2.f32 %v640_v54  ;;  %364 = vrot.lane.b32.xlu0 %v1164_v55, %s1423_s25  ;;  %v372_v10 = vmul.f32 %v1164_v55, %v1010_v3  ;;  %v392_v16 = vmul.f32 %v1164_v55, %v1012_v12  ;;  %v382_v17 = vmul.f32 %v1164_v55, %v1011_v13 }
 0x14d   : > { %1175 = vpow2.f32 %v325_v53  ;;  %v1017_v53 = vld [vmem:[%s1605_s9 + $0x98] sm:$0xff] }
 0x14e   : > { %v1685_v60 = vpop.eup %1165  ;;  %1177 = vpow2.f32 %v351_v56 }
 0x14f   : > { %v1687_v61 = vpop.eup %1167  ;;  %505 = vrot.lane.b32.xlu1 %v1685_v60, %s1426_s27  ;;  %1179 = vpow2.f32 %v399_v58 }
 0x150   : > { %458 = vrot.lane.b32.xlu0 %v1687_v61, %s1424_s28  ;;  %1181 = vpow2.f32 %v446_v62  ;;  %v466_v47 = vmul.f32 %v1687_v61, %v1016_v37  ;;  %v486_v52 = vmul.f32 %v1687_v61, %v1018_v48 }
 0x151   : > { %1183 = vpow2.f32 %v493_v0  ;;  %v1020_v0 = vld [vmem:[%s1605_s9 + $0xa0] sm:$0xff] }
 0x152   : > { %v1695_v2 = vpop.eup %1169  ;;  %1185 = vpow2.f32 %v540_v9 }
 0x153   : > { %v1698_v7 = vpop.eup %1171  ;;  %599 = vrot.lane.b32.xlu1 %v1695_v2, %s1428_s12  ;;  %1187 = vpow2.f32 %v587_v5 }
 0x154   : > { %552 = vrot.lane.b32.xlu0 %v1698_v7, %s1427_s6  ;;  %1189 = vpow2.f32 %v634_v14 }
 0x156   : > { %v1705_v11 = vpop.eup %1173 }
 0x157   : > { %374 = vrot.lane.b32.xlu1 %v372_v10, %s1423_s25  ;;  %v1710_v15 = vpop.eup %1175  ;;  %v1021_v10 = vld [vmem:[%s1605_s9 + $0xe0] sm:$0xff] }
 0x158   : > { %646 = vrot.lane.b32.xlu0 %v1705_v11, %s2064_s14  ;;  %v1178_v6 = vpop.eup %1177  ;;  %v334_v28 = vmul.f32 %v1710_v15, %v1716_v19  ;;  %v340_v30 = vmul.f32 %v1710_v15, %v1721_v26  ;;  %v346_v31 = vmul.f32 %v1710_v15, %v1724_v27 }
 0x159   : > { %v1180_v20 = vpop.eup %1179  ;;  %v370_v22 = vmul.f32 %v1178_v6, %v1010_v3  ;;  %v390_v23 = vmul.f32 %v1178_v6, %v1012_v12  ;;  %v380_v24 = vmul.f32 %v1178_v6, %v1011_v13  ;;  %v1730_v29 = vadd.f32 %v1178_v6, %v1710_v15 }
 0x15a   : > { %v1182_v32 = vpop.eup %1181  ;;  %v427_v34 = vmul.f32 %v1180_v20, %v1014_v18  ;;  %v417_v36 = vmul.f32 %v1180_v20, %v1013_v25  ;;  %v437_v41 = vmul.f32 %v1180_v20, %v1015_v38  ;;  %v476_v3 = vmul.f32 %v1687_v61, %v1017_v53  ;;  %v1024_v18 = vld [vmem:[%s1605_s9 + $0xe8] sm:$0xff]  ;;  %v1027_v38 = vld [vmem:[%s1605_s9 + $0xf0] sm:$0xff] }
 0x15b   : > { %394 = vrot.lane.b32.xlu1 %v392_v16, %s1423_s25  ;;  %v1741_v39 = vadd.f32 %v1180_v20, %v1730_v29  ;;  %v1184_v40 = vpop.eup %1183  ;;  %v371_v42 = vadd.f32 %v370_v22, %v334_v28  ;;  %v381_v43 = vadd.f32 %v380_v24, %v340_v30  ;;  %v391_v44 = vadd.f32 %v390_v23, %v346_v31  ;;  %v1023_v24 = vld [vmem:[%s1605_s9 + $0xa8] sm:$0xff] }
 0x15c   : > { %384 = vrot.lane.b32.xlu0 %v382_v17, %s1423_s25  ;;  %v1186_v46 = vpop.eup %1185  ;;  %v464_v49 = vmul.f32 %v1182_v32, %v1016_v37  ;;  %v484_v51 = vmul.f32 %v1182_v32, %v1018_v48  ;;  %v474_v56 = vmul.f32 %v1182_v32, %v1017_v53  ;;  %v521_v9 = vmul.f32 %v1184_v40, %v1020_v0  ;;  %v1022_v17 = vld [vmem:[%s1605_s9 + $0x68] sm:$0xff] }
 0x15d   : > { %v1746_v45 = vadd.f32 %v1182_v32, %v1741_v39  ;;  %v1188_v55 = vpop.eup %1187  ;;  %v418_v57 = vadd.f32 %v417_v36, %v371_v42  ;;  %v428_v58 = vadd.f32 %v427_v34, %v381_v43  ;;  %v438_v59 = vadd.f32 %v437_v41, %v391_v44  ;;  %v1025_v34 = vld [vmem:[%s1605_s9 + $0x70] sm:$0xff] }
 0x15e   : > { %v1190_v63 = vpop.eup %1189  ;;  %v511_v4 = vmul.f32 %v1184_v40, %v1019_v1  ;;  %v531_v12 = vmul.f32 %v1184_v40, %v1021_v10  ;;  %v523_v61 = vmul.f32 %v1685_v60, %v1020_v0  ;;  %v513_v20 = vmul.f32 %v1685_v60, %v1019_v1 }
 0x15f   : > { %431 = vrot.lane.b32.xlu1 %v429_v33, %s1425_s30  ;;  %v1753_v54 = vadd.f32 %v1184_v40, %v1746_v45  ;;  %v465_v13 = vadd.f32 %v464_v49, %v418_v57  ;;  %v475_v14 = vadd.f32 %v474_v56, %v428_v58  ;;  %v485_v6 = vadd.f32 %v484_v51, %v438_v59  ;;  %v1026_v33 = vld [vmem:[%s1605_s9 + $0xb0] sm:$0xff] }
 0x160   : > { %421 = vrot.lane.b32.xlu0 %v419_v35, %s1425_s30  ;;  %v558_v22 = vmul.f32 %v1186_v46, %v1022_v17  ;;  %v578_v23 = vmul.f32 %v1186_v46, %v1024_v18  ;;  %v568_v25 = vmul.f32 %v1186_v46, %v1023_v24  ;;  %v560_v32 = vmul.f32 %v1698_v7, %v1022_v17 }
 0x161   : > { %v1758_v62 = vadd.f32 %v1186_v46, %v1753_v54  ;;  %v512_v28 = vadd.f32 %v511_v4, %v465_v13  ;;  %v522_v30 = vadd.f32 %v521_v9, %v475_v14  ;;  %v532_v31 = vadd.f32 %v531_v12, %v485_v6  ;;  %v1028_v46 = vld [vmem:[%s1605_s9 + $0x78] sm:$0xff] }
 0x162   : > { %v533_v35 = vmul.f32 %v1685_v60, %v1021_v10  ;;  %v615_v36 = vmul.f32 %v1188_v55, %v1026_v33  ;;  %v605_v37 = vmul.f32 %v1188_v55, %v1025_v34  ;;  %v625_v40 = vmul.f32 %v1188_v55, %v1027_v38 }
 0x163   : > { %468 = vrot.lane.b32.xlu1 %v466_v47, %s1424_s28  ;;  %v1766_v5 = vadd.f32 %v1188_v55, %v1758_v62  ;;  %v559_v41 = vadd.f32 %v558_v22, %v512_v28  ;;  %v569_v42 = vadd.f32 %v568_v25, %v522_v30  ;;  %v579_v43 = vadd.f32 %v578_v23, %v532_v31  ;;  %v1029_v47 = vld [vmem:[%s1605_s9 + $0xb8] sm:$0xff] }
 0x164   : > { %441 = vrot.lane.b32.xlu0 %v439_v50, %s1425_s30  ;;  %v580_v44 = vmul.f32 %v1698_v7, %v1024_v18  ;;  %v570_v48 = vmul.f32 %v1698_v7, %v1023_v24  ;;  %v652_v49 = vmul.f32 %v1190_v63, %v1028_v46  ;;  %v662_v60 = vmul.f32 %v1190_v63, %v1029_v47  ;;  %v1030_v50 = vld [vmem:[%s1605_s9 + $0xf8] sm:$0xff]  ;;  %s2052_s9 = smul.u32 24, %s1601_s26 }
 0x165   : > { %v644_v16 = vadd.f32 %v1190_v63, %v1766_v5  ;;  %v672_v51 = vmul.f32 %v1190_v63, %v1030_v50  ;;  %v606_v53 = vadd.f32 %v605_v37, %v559_v41  ;;  %v616_v56 = vadd.f32 %v615_v36, %v569_v42 }
 0x166   : > { %v626_v55 = vadd.f32 %v625_v40, %v579_v43  ;;  %v617_v58 = vmul.f32 %v1695_v2, %v1026_v33  ;;  %v654_v63 = vmul.f32 %v1705_v11, %v1028_v46  ;;  %v627_v4 = vmul.f32 %v1695_v2, %v1027_v38  ;;  %s1810_s25 = scalar_lea.vmem [#allocation5], %s2052_s9 }
 0x167   : > { %488 = vrot.lane.b32.xlu1 %v486_v52, %s1424_s28  ;;  %1191 = vrcp.f32 %v644_v16  ;;  %v607_v52 = vmul.f32 %v1695_v2, %v1025_v34  ;;  %v653_v7 = vadd.f32 %v652_v49, %v606_v53  ;;  %v663_v1 = vadd.f32 %v662_v60, %v616_v56  ;;  %s755_s30 = sshll.u32 %s1810_s25, 4  ;;  %s1848_s30 = int_to_ptr.vmem [resolvable:$true] %s755_s30 }
 0x168   : > { %478 = vrot.lane.b32.xlu0 %v476_v3, %s1424_s28  ;;  %v673_v3 = vadd.f32 %v672_v51, %v626_v55  ;;  %v674_v14 = vmul.f32 %v1705_v11, %v1030_v50  ;;  %v664_v6 = vmul.f32 %v1705_v11, %v1029_v47  ;;  %v327_v2 = vsub.f32 %v1647_v8, %v1650_v21  ;;  %s1046_s28 = smul.u32 6, %s1405_s19 }
 0x169   : > { %v407_v47 = vadd.f32 %v1710_v15, %v1730_v29 }
 0x16a   : > { %v328_v11 = vmul.f32 1.442695, %v327_v2 }
 0x16b   : > { %525 = vrot.lane.b32.xlu1 %v523_v61, %s1426_s27  ;;  %v454_v50 = vadd.f32 %v1741_v39, %v407_v47 }
 0x16c   : > { %515 = vrot.lane.b32.xlu0 %v513_v20, %s1426_s27  ;;  %1193 = vpow2.f32 %v328_v11 }
 0x16f   : > { %562 = vrot.lane.b32.xlu1 %v560_v32, %s1427_s6 }
 0x170   : > { %535 = vrot.lane.b32.xlu0 %v533_v35, %s1426_s27  ;;  %s2050_s27 = sshll.u32 %s1601_s26, 3 }
 0x171   : > { %v1192_v57 = vpop.eup %1191  ;;  %s1853_s7 = scalar_lea.vmem [#allocation8], %s2050_s27 }
 0x172   : > { %v681_v59 = vmul.f32 %v1192_v57, %v644_v16 }
 0x173   : > { %582 = vrot.lane.b32.xlu1 %v580_v44, %s1427_s6 }
 0x174   : > { %572 = vrot.lane.b32.xlu0 %v570_v48, %s1427_s6  ;;  %v682_v0 = vsub.f32 2.0, %v681_v59  ;;  %s1845_s6 = sadd.s32 %s1401_s18, %s1046_s28 }
 0x176   : > { %v1797_v9 = vmul.f32 %v1192_v57, %v682_v0  ;;  %v1194_v61 = vpop.eup %1193  ;;  %v501_v57 = vadd.f32 %v1746_v45, %v454_v50 }
 0x177   : > { %619 = vrot.lane.b32.xlu1 %v617_v58, %s1428_s12  ;;  %v336_v46 = vmul.f32 %v1194_v61, %v1716_v19  ;;  %v348_v56 = vmul.f32 %v1194_v61, %v1724_v27  ;;  %v342_v58 = vmul.f32 %v1194_v61, %v1721_v26 }
 0x178   : > { %609 = vrot.lane.b32.xlu0 %v607_v52, %s1428_s12  ;;  %v697_v10 = vmul.f32 %v1797_v9, %v653_v7  ;;  %v705_v12 = vmul.f32 %v1797_v9, %v663_v1  ;;  %v715_v13 = vmul.f32 %v1797_v9, %v673_v3  ;;  %v548_v7 = vadd.f32 %v1753_v54, %v501_v57 }
 0x17a   : > { %698 = vst.msk [vmem:[%s1810_s25] sm:$0xff] %vm689_vm0, %v697_v10  ;;  %1031 = vst.msk [vmem:[%s1810_s25 + $0x8] sm:$0xff] %vm689_vm0, %v705_v12  ;;  %v595_v27 = vadd.f32 %v1758_v62, %v548_v7 }
 0x17b   : > { %656 = vrot.lane.b32.xlu1 %v654_v63, %s2064_s14  ;;  %1033 = vst.msk [vmem:[%s1810_s25 + $0x10] sm:$0xff] %vm689_vm0, %v715_v13  ;;  %s1437_s25 = smov [#allocation5]  }
 0x17c   : > { %629 = vrot.lane.b32.xlu0 %v627_v4, %s1428_s12  ;;  %v642_v13 = vadd.f32 %v1766_v5, %v595_v27  ;;  %s2051_s12 = sshll.u32 %s1845_s6, 7  ;;  %s1231_s28 = sshll.u32 %s1437_s25, 4  ;;  %s1232_s28 = int_to_ptr.vmem [resolvable:$false] %s1231_s28 }
 0x17d   : > { %s1863_s29 = scalar_lea.hbm %s2039_s1, %s2051_s12  ;;  %s1233_s27 = scalar_lea.vmem %s1232_s28, 768 }
 0x17e   : > { %v688_v62 = vmul.f32 %v1797_v9, %v642_v13  ;;  %p1234_p11 = scmp.lt.s32.totalorder %s1848_s30, %s1232_s28 }
 0x17f   : > { %676 = vrot.lane.b32.xlu1 %v674_v14, %s2064_s14 }
 0x180   : > { %666 = vrot.lane.b32.xlu0 %v664_v6, %s2064_s14  ;;  %690 = vst.msk [vmem:[%s1853_s7] sm:$0xff] %vm689_vm0, %v688_v62  ;;  %s1227_s14 = scalar_lea.vmem %s1848_s30, 384 }
 0x181   : > { %p1228_p8 = scmp.ne.s32.totalorder %s1848_s30, %s1227_s14  ;;  %p1235_p13 = scmp.lt.s32.totalorder %s1233_s27, %s1227_s14 }
 0x183   : > { %p1229_p12 = pnand %p1228_p8, %p2065_p9  ;;  %p1236_p1 = por %p1235_p13, %p1234_p11 }
 0x185   : > { %p1230_p0 = pneg %p1229_p12 }
 0x187   : > { %p1237_p4 = pnand %p1236_p1, %p1230_p0 }
 0x1bd   : > { %v412_v16 = vpop.permute.xlu1 %411 }
 0x1be   : > { %v365_v17 = vpop.permute.xlu0 %364 }
 0x1bf   : > { %v367_v18 = vadd.f32 %v1194_v61, %v365_v17 }
 0x1c1   : > { %v414_v20 = vadd.f32 %v412_v16, %v367_v18  ;;  %v506_v22 = vpop.permute.xlu1 %505  ;;  %v408_v53 = vadd.f32 %v1194_v61, %v367_v18 }
 0x1c2   : > { %v459_v23 = vpop.permute.xlu0 %458 }
 0x1c3   : > { %v461_v24 = vadd.f32 %v459_v23, %v414_v20  ;;  %v455_v39 = vadd.f32 %v414_v20, %v408_v53 }
 0x1c5   : > { %v600_v25 = vpop.permute.xlu1 %599  ;;  %v1822_v30 = vadd.f32 %v506_v22, %v461_v24  ;;  %v502_v54 = vadd.f32 %v461_v24, %v455_v39 }
 0x1c6   : > { %v553_v28 = vpop.permute.xlu0 %552 }
 0x1c7   : > { %v1825_v33 = vadd.f32 %v553_v28, %v1822_v30  ;;  %v549_v9 = vadd.f32 %v1822_v30, %v502_v54 }
 0x1c9   : > { %v375_v31 = vpop.permute.xlu1 %374  ;;  %v1828_v34 = vadd.f32 %v600_v25, %v1825_v33 }
 0x1ca   : > { %v647_v32 = vpop.permute.xlu0 %646  ;;  %v377_v49 = vadd.f32 %v375_v31, %v336_v46 }
 0x1cb   : > { %v649_v37 = vadd.f32 %v647_v32, %v1828_v34 }
 0x1cd   : > { %v395_v8 = vpop.permute.xlu1 %394  ;;  %1195 = vrcp.f32 %v649_v37 }
 0x1ce   : > { %v385_v21 = vpop.permute.xlu0 %384  ;;  %v397_v52 = vadd.f32 %v395_v8, %v348_v56 }
 0x1cf   : > { %v387_v0 = vadd.f32 %v385_v21, %v342_v58 }
 0x1d1   : > { %v432_v35 = vpop.permute.xlu1 %431 }
 0x1d2   : > { %v422_v36 = vpop.permute.xlu0 %421  ;;  %v434_v63 = vadd.f32 %v432_v35, %v387_v0 }
 0x1d3   : > { %v424_v55 = vadd.f32 %v422_v36, %v377_v49 }
 0x1d5   : > { %v469_v38 = vpop.permute.xlu1 %468 }
 0x1d6   : > { %v442_v40 = vpop.permute.xlu0 %441  ;;  %v471_v15 = vadd.f32 %v469_v38, %v424_v55 }
 0x1d7   : > { %v1196_v51 = vpop.eup %1195  ;;  %v444_v1 = vadd.f32 %v442_v40, %v397_v52 }
 0x1d8   : > { %v685_v19 = vmul.f32 %v1196_v51, %v649_v37 }
 0x1d9   : > { %v489_v41 = vpop.permute.xlu1 %488 }
 0x1da   : > { %v479_v42 = vpop.permute.xlu0 %478  ;;  %v686_v26 = vsub.f32 2.0, %v685_v19  ;;  %v491_v4 = vadd.f32 %v489_v41, %v444_v1 }
 0x1db   : > { %v481_v14 = vadd.f32 %v479_v42, %v434_v63 }
 0x1dc   : > { %v687_v61 = vmul.f32 %v1196_v51, %v686_v26 }
 0x1dd   : > { %v526_v43 = vpop.permute.xlu1 %525 }
 0x1de   : > { %v516_v44 = vpop.permute.xlu0 %515  ;;  %v528_v11 = vadd.f32 %v526_v43, %v481_v14 }
 0x1df   : > { %v518_v3 = vadd.f32 %v516_v44, %v471_v15 }
 0x1e1   : > { %v563_v48 = vpop.permute.xlu1 %562 }
 0x1e2   : > { %v536_v60 = vpop.permute.xlu0 %535  ;;  %v565_v10 = vadd.f32 %v563_v48, %v518_v3 }
 0x1e3   : > { %v538_v6 = vadd.f32 %v536_v60, %v491_v4 }
 0x1e5   : > { %v583_v59 = vpop.permute.xlu1 %582 }
 0x1e6   : > { %v573_v29 = vpop.permute.xlu0 %572  ;;  %v585_v5 = vadd.f32 %v583_v59, %v538_v6 }
 0x1e7   : > { %v575_v20 = vadd.f32 %v573_v29, %v528_v11 }
 0x1e9   : > { %v620_v45 = vpop.permute.xlu1 %619 }
 0x1ea   : > { %v610_v12 = vpop.permute.xlu0 %609  ;;  %v622_v24 = vadd.f32 %v620_v45, %v575_v20 }
 0x1eb   : > { %v612_v2 = vadd.f32 %v610_v12, %v565_v10 }
 0x1ed   : > { %v657_v16 = vpop.permute.xlu1 %656 }
 0x1ee   : > { %v630_v17 = vpop.permute.xlu0 %629  ;;  %v659_v18 = vadd.f32 %v657_v16, %v612_v2 }
 0x1ef   : > { %v632_v22 = vadd.f32 %v630_v17, %v585_v5 }
 0x1f0   : > { %v699_v23 = vmul.f32 %v687_v61, %v659_v18 }
 0x1f1   : > { %v677_v25 = vpop.permute.xlu1 %676 }
 0x1f2   : > { %1240 = shalt.err (!%p1237_p4)
}
 0x1f3   : > { %s1241_s15 = scalar_lea.hbm %s1863_s29, 384  ;;  %s1245_s25 = scalar_lea.hbm %s2039_s1, 1536 }
 0x1f4   : > { %p1242_p3 = scmp.ne.s32.totalorder %s1863_s29, %s1241_s15  ;;  %p1246_p2 = scmp.lt.u32.totalorder %s1863_s29, %s2039_s1 }
 0x1f5   : > { %p1247_p5 = scmp.lt.u32.totalorder %s1245_s25, %s1241_s15  ;;  %p1249_p8 = scmp.lt.u32.totalorder %s1241_s15, %s1863_s29 }
 0x1f6   : > { %p1243_p6 = pnand %p1242_p3, %p2065_p9 }
 0x1f7   : > { %p1248_p10 = por %p1247_p5, %p1246_p2 }
 0x1f8   : > { %p1244_p7 = pneg %p1243_p6 }
 0x1f9   : > { %p1250_p12 = por %p1249_p8, %p1248_p10 }
 0x1fb   : > { %p1251_p0 = pnand %p1250_p12, %p1244_p7 }
 0x1fd   : > { %1254 = shalt.err (!%p1251_p0)
}
 0x1fe   : > { %s2053_s27 = smov 128   ;;  %s2054_s14 = smov 256   ;;  %v667_v28 = vpop.permute.xlu0 %666  ;;  %v679_v30 = vadd.f32 %v677_v25, %v632_v22  ;;  %701 = vrot.lane.b32.xlu0 %v699_v23, %s1436_s13  ;;  %v596_v31 = vadd.f32 %v1825_v33, %v549_v9 }
 0x1ff   : > { %s2055_s12 = smov 8   ;;  %v669_v32 = vadd.f32 %v667_v28, %v622_v24  ;;  %s1039_s9 = sshll.u32 %s1405_s19, 1 }
 0x200   : > { %1050 = dma.vmem_to_hbm [thread:$0]  (%p2065_p9), %s1848_s30, 384, %s1863_s29, %s726_s11, %s2053_s27, %s2054_s14, %s2055_s12   ;;  %v718_v8 = vmul.f32 %v687_v61, %v679_v30  ;;  %v643_v35 = vadd.f32 %v1828_v34, %v596_v31 }
 0x201   : > { %v708_v21 = vmul.f32 %v687_v61, %v669_v32  ;;  %s2066_s30 = smul.u32 24, %s1601_s26  ;;  %s786_s15 = sadd.s32 %s1401_s18, %s1039_s9 }
 0x202   : > { %720 = vrot.lane.b32.xlu0 %v718_v8, %s1436_s13  ;;  %v691_v36 = vmul.f32 %v687_v61, %v643_v35  ;;  %s730_s24 = sand.u32 1, %s1510_s23   ;;  %s790_s25 = sshll.u32 %s1853_s7, 4  ;;  %s1919_s25 = int_to_ptr.vmem [resolvable:$true] %s790_s25 }
 0x203   : > { %710 = vrot.lane.b32.xlu1 %v708_v21, %s1436_s13  ;;  %s252_s29 = scalar_lea.vmem [#allocation6], %s2066_s30  ;;  %s1040_s28 = sshll.u32 %s786_s15, 7 }
 0x204   : > { %s772_s11 = sshll.u32 %s252_s29, 4  ;;  %s2067_s27 = sshll.u32 %s1601_s26, 3  ;;  %s1905_s11 = int_to_ptr.vmem [resolvable:$true] %s772_s11 }
 0x205   : > { %s1909_s14 = scalar_lea.vmem [#allocation9], %s2067_s27  ;;  %s1925_s27 = scalar_lea.hbm %s2041_s3, %s1040_s28 }
 0x206   : > { %s805_s19 = sshll.u32 %s1909_s14, 4  ;;  %s1931_s12 = scalar_lea.hbm %s2042_s4, %s1040_s28  ;;  %s1933_s19 = int_to_ptr.vmem [resolvable:$true] %s805_s19 }
 0x207   : > { %693 = vrot.lane.b32.xlu1 %v691_v36, %s1436_s13  ;;  %s2068_s13 = sshll.u32 %s1845_s6, 7  ;;  %s1255_s30 = scalar_lea.vmem %s1905_s11, 384 }
 0x208   : > { %s1917_s23 = scalar_lea.hbm %s2040_s2, %s2068_s13  ;;  %s1935_s13 = scalar_lea.sflag [#allocation7], %s730_s24 }
 0x209   : > { %p1256_p11 = scmp.ne.s32.totalorder %s1905_s11, %s1255_s30  ;;  %s1441_s18 = smov [#allocation6]  }
 0x20a   : > { %s1259_s7 = sshll.u32 %s1441_s18, 4  ;;  %s1260_s7 = int_to_ptr.vmem [resolvable:$false] %s1259_s7 }
 0x20b   : > { %p1257_p13 = pnand %p1256_p11, %p2065_p9  ;;  %s1261_s9 = scalar_lea.vmem %s1260_s7, 768 }
 0x20c   : > { %p1262_p4 = scmp.lt.s32.totalorder %s1905_s11, %s1260_s7  ;;  %p1263_p3 = scmp.lt.s32.totalorder %s1261_s9, %s1255_s30 }
 0x20d   : > { %p1258_p1 = pneg %p1257_p13 }
 0x20e   : > { %p1264_p6 = por %p1263_p3, %p1262_p4 }
 0x210   : > { %p1265_p7 = pnand %p1264_p6, %p1258_p1 }
 0x270   : > { %v702_v33 = vpop.permute.xlu0 %701 }
 0x271   : > { %704 = vst.msk [vmem:[%s252_s29] sm:$0xff] %vm689_vm0, %v702_v33 }
 0x274   : > { %v721_v34 = vpop.permute.xlu0 %720 }
 0x275   : > { %v711_v37 = vpop.permute.xlu1 %710  ;;  %1034 = vst.msk [vmem:[%s252_s29 + $0x10] sm:$0xff] %vm689_vm0, %v721_v34 }
 0x276   : > { %1032 = vst.msk [vmem:[%s252_s29 + $0x8] sm:$0xff] %vm689_vm0, %v711_v37 }
 0x277   : > { %1268 = shalt.err (!%p1265_p7)
}
 0x278   : > { %s1269_s29 = scalar_lea.hbm %s1917_s23, 384  ;;  %s1273_s15 = scalar_lea.hbm %s2040_s2, 1536 }
 0x279   : > { %p1270_p2 = scmp.ne.s32.totalorder %s1917_s23, %s1269_s29  ;;  %p1274_p8 = scmp.lt.u32.totalorder %s1917_s23, %s2040_s2 }
 0x27a   : > { %p1275_p12 = scmp.lt.u32.totalorder %s1273_s15, %s1269_s29  ;;  %p1277_p11 = scmp.lt.u32.totalorder %s1269_s29, %s1917_s23 }
 0x27b   : > { %p1271_p5 = pnand %p1270_p2, %p2065_p9 }
 0x27c   : > { %p1276_p0 = por %p1275_p12, %p1274_p8 }
 0x27d   : > { %p1272_p10 = pneg %p1271_p5 }
 0x27e   : > { %p1278_p13 = por %p1277_p11, %p1276_p0 }
 0x280   : > { %p1279_p1 = pnand %p1278_p13, %p1272_p10 }
 0x282   : > { %1282 = shalt.err (!%p1279_p1)
}
 0x283   : > { %s2069_s30 = smov 8   ;;  %s2070_s7 = smov 256  }
 0x284   : > { %s2071_s9 = smov 128   ;;  %s1283_s24 = scalar_lea.vmem %s1919_s25, 128 }
 0x285   : > { %1051 = dma.vmem_to_hbm [thread:$0]  (%p2065_p9), %s1905_s11, 384, %s1917_s23, %s1935_s13, %s2071_s9, %s2070_s7, %s2069_s30  }
 0x286   : > { %p1284_p4 = scmp.ne.s32.totalorder %s1919_s25, %s1283_s24  ;;  %s1442_s29 = smov [#allocation8]  }
 0x287   : > { %s1287_s28 = sshll.u32 %s1442_s29, 4  ;;  %s1288_s28 = int_to_ptr.vmem [resolvable:$false] %s1287_s28 }
 0x288   : > { %p1285_p3 = pnand %p1284_p4, %p2065_p9  ;;  %s1289_s15 = scalar_lea.vmem %s1288_s28, 256 }
 0x289   : > { %p1290_p7 = scmp.lt.s32.totalorder %s1919_s25, %s1288_s28  ;;  %p1291_p2 = scmp.lt.s32.totalorder %s1289_s15, %s1283_s24 }
 0x28a   : > { %p1286_p6 = pneg %p1285_p3 }
 0x28b   : > { %p1292_p5 = por %p1291_p2, %p1290_p7 }
 0x28d   : > { %p1293_p10 = pnand %p1292_p5, %p1286_p6 }
 0x28f   : > { %1296 = shalt.err (!%p1293_p10)
}
 0x290   : > { %s1297_s11 = scalar_lea.hbm %s1925_s27, 128  ;;  %s1301_s18 = scalar_lea.hbm %s2041_s3, 512 }
 0x291   : > { %p1298_p8 = scmp.ne.s32.totalorder %s1925_s27, %s1297_s11  ;;  %p1302_p11 = scmp.lt.u32.totalorder %s1925_s27, %s2041_s3 }
 0x292   : > { %p1303_p13 = scmp.lt.u32.totalorder %s1301_s18, %s1297_s11  ;;  %p1305_p4 = scmp.lt.u32.totalorder %s1297_s11, %s1925_s27 }
 0x293   : > { %p1299_p12 = pnand %p1298_p8, %p2065_p9 }
 0x294   : > { %p1304_p1 = por %p1303_p13, %p1302_p11 }
 0x295   : > { %p1300_p0 = pneg %p1299_p12 }
 0x296   : > { %p1306_p3 = por %p1305_p4, %p1304_p1 }
 0x298   : > { %p1307_p6 = pnand %p1306_p3, %p1300_p0 }
 0x29a   : > { %1310 = shalt.err (!%p1307_p6)
}
 0x29b   : > { %1052 = dma.vmem_to_hbm [thread:$0]  (%p2065_p9), %s1919_s25, 128, %s1925_s27, %s1935_s13   ;;  %v694_v38 = vpop.permute.xlu1 %693 }
 0x29c   : > { %696 = vst.msk [vmem:[%s1909_s14] sm:$0xff] %vm689_vm0, %v694_v38  ;;  %s741_s9 = scalar_lea.sflag [#allocation10], %s1601_s26  ;;  %s1311_s24 = scalar_lea.vmem %s1933_s19, 128 }
 0x29d   : > { %p1312_p7 = scmp.ne.s32.totalorder %s1933_s19, %s1311_s24  ;;  %s1443_s29 = smov [#allocation9]  }
 0x29e   : > { %s1315_s28 = sshll.u32 %s1443_s29, 4  ;;  %s1316_s28 = int_to_ptr.vmem [resolvable:$false] %s1315_s28 }
 0x29f   : > { %p1313_p2 = pnand %p1312_p7, %p2065_p9  ;;  %s1317_s15 = scalar_lea.vmem %s1316_s28, 256 }
 0x2a0   : > { %p1318_p10 = scmp.lt.s32.totalorder %s1933_s19, %s1316_s28  ;;  %p1319_p8 = scmp.lt.s32.totalorder %s1317_s15, %s1311_s24 }
 0x2a1   : > { %p1314_p5 = pneg %p1313_p2 }
 0x2a2   : > { %p1320_p12 = por %p1319_p8, %p1318_p10 }
 0x2a4   : > { %p1321_p0 = pnand %p1320_p12, %p1314_p5 }
 0x2a6   : > { %1324 = shalt.err (!%p1321_p0)
}
 0x2a7   : > { %s1325_s26 = scalar_lea.hbm %s1931_s12, 128  ;;  %s1329_s27 = scalar_lea.hbm %s2042_s4, 512 }
 0x2a8   : > { %p1326_p11 = scmp.ne.s32.totalorder %s1931_s12, %s1325_s26  ;;  %p1330_p4 = scmp.lt.u32.totalorder %s1931_s12, %s2042_s4 }
 0x2a9   : > { %p1331_p3 = scmp.lt.u32.totalorder %s1329_s27, %s1325_s26  ;;  %p1333_p7 = scmp.lt.u32.totalorder %s1325_s26, %s1931_s12 }
 0x2aa   : > { %p1327_p13 = pnand %p1326_p11, %p2065_p9 }
 0x2ab   : > { %p1332_p6 = por %p1331_p3, %p1330_p4 }
 0x2ac   : > { %p1328_p1 = pneg %p1327_p13 }
 0x2ad   : > { %p1334_p2 = por %p1333_p7, %p1332_p6 }
 0x2af   : > { %p1335_p5 = pnand %p1334_p2, %p1328_p1 }
 0x2b1   : > { %1338 = shalt.err (!%p1335_p5)
}
 0x2b2   : > { %1053 = dma.vmem_to_hbm [thread:$0]  (%p2065_p9), %s1933_s19, 128, %s1931_s12, %s741_s9  }
 0x2b3 PF: > { %s2072_s23 = sld [smem:[#allocation15_spill]]  ;;  %p1076_p10 = scmp.ge.s32.totalorder %s1417_s22, 2 }
 0x2b4   : > { %p2073_p8 = scmp.ne.s32.totalorder %s2062_s8, 0 }
 0x2b6   : > { %p1063_p12 = pnand %p1076_p10, %p2073_p8 }
 0x2b9   : > { %s817_s6 = sand.u32 1, %s2072_s23  }
 0x2ba   : > { %s818_s18 = scalar_lea.sflag [#allocation4], %s817_s6 }
 0x2bb   : > { %1376 = dma.done.wait (!%p1063_p12), %s818_s18, 384  }
 0x2bc   : > { %1378 = vsyncadd (!%p1063_p12), %s818_s18, 4294966912  ;;  %s2074_s30 = sadd.s32 4294967294, %s1417_s22  }
 0x2bd   : > { %s826_s7 = sand.u32 1, %s2074_s30  }
 0x2be   : > { %s827_s24 = scalar_lea.sflag [#allocation7], %s826_s7 }
 0x2bf   : > { %1380 = dma.done.wait (!%p1063_p12), %s827_s24, 512  }
 0x2c0   : > { %1382 = vsyncadd (!%p1063_p12), %s827_s24, 4294966784  ;;  %s845_s5 = scalar_lea.sflag [#allocation10], %s817_s6 }
 0x2c1   : > { %1384 = dma.done.wait (!%p1063_p12), %s845_s5, 128  }
 0x2c2   : > { %1386 = vsyncadd (!%p1063_p12), %s845_s5, 4294967168  ;;  %s27_s22 = sadd.s32 1, %s1417_s22   ;;  %s2075_s8 = sld [smem:[#allocation16_spill]] }
 0x2c3   : > { %p24_p9 = scmp.ge.s32.totalorder %s27_s22, 6   ;;  %s2076_s12 = sld [smem:[#allocation17_spill]] }
 0x2c4   : > { %s2077_s15 = smov %s1393_s16  ;;  %s2078_s16 = smov %s1397_s17 }
 0x2c5   : > { %s2079_s17 = smov %s1553_s10  ;;  %s2080_s18 = smov %s1409_s20 }
 0x2c6   : > { %s2081_s19 = smov %s1413_s21  ;;  %26 = sbr.rel (!%p24_p9) target bundleno = 11 (0xb), region = 153 }
 0x2c8   : > { %s2082_s20 = smov %s2075_s8 }
 0x2c9   : > { %s2083_s21 = smov %s2076_s12 }
 0x2cd   :  { %850 = vsyncpa [#allocation3], 1 }
 0x2ce   :  { %852 = vsyncpa [#allocation3 + $0x1], 1 }
 0x2cf   :  { %853 = vsyncpa [#allocation4], 1 }
 0x2d0   :  { %855 = vsyncpa [#allocation4 + $0x1], 1 }
 0x2d1   :  { %856 = vsyncpa [#allocation7], 1 }
 0x2d2   :  { %858 = vsyncpa [#allocation7 + $0x1], 1 }
 0x2d3   :  { %859 = vsyncpa [#allocation10], 1 }
 0x2d4   :  { %861 = vsyncpa [#allocation10 + $0x1], 1 }

</bundles_post_ra>
